<compile_context>
chip_gen: v6e
topology: v6e:2x2x1
jax: 0.10.0
libtpu: 0.0.40
codegen_flags: <defaults>
</compile_context>

<pallas_src>
import functools

import jax
import jax.numpy as jnp
import numpy as np
from jax.experimental import pallas as pl
from jax.experimental.pallas import tpu as pltpu


# ----------------------------------------------------------------------------
# torch bilinear 2x (align_corners=False) interpolation weights as a matrix.
# ----------------------------------------------------------------------------
def _upsample_matrix(n):
    """Returns U of shape (2n, n) with up(x) = U @ x along that axis."""
    U = np.zeros((2 * n, n), dtype=np.float32)
    for d in range(2 * n):
        src = max((d + 0.5) * 0.5 - 0.5, 0.0)       # torch clamps negative src to 0
        i0 = int(np.floor(src))
        i1 = min(i0 + 1, n - 1)
        f = src - i0
        U[d, i0] += 1.0 - f
        U[d, i1] += f
    return U


# ----------------------------------------------------------------------------
# Fused decoder-block kernel: one batch element per grid step.
# ----------------------------------------------------------------------------
def _decoder_kernel(x_ref, xs_ref, kt_ref, w1_ref, w2_ref, o_ref, xc_ref,
                    *, H, W, cin, cskip):
    f32 = jnp.float32
    HW = H * W
    PAD = 128                                       # lane-aligned zero-pad width

    # ---- channel concat (torch cat dim=1) into VMEM scratch -----------------
    xc_ref[0:cin, :] = x_ref[0].astype(f32)
    xc_ref[cin:cin + cskip, :] = xs_ref[0].astype(f32)

    # ---- 2x bilinear upsample: one MXU matmul with kron(Uh, Uw)^T -----------
    # u[c, h*W + w] = sum_{i,j} U[h,i] U[w,j] x[c, i*W0 + j]
    u = jnp.dot(xc_ref[...], kt_ref[...], preferred_element_type=f32)   # (C, HW)

    # width-boundary masks shared by both convs (w-1 / w+1 taps wrap rows).
    colw = jax.lax.broadcasted_iota(jnp.int32, (1, HW), 1) % W
    not_first_col = colw != 0            # valid positions when reading column w-1
    not_last_col = colw != (W - 1)       # valid positions when reading column w+1

    def conv3x3_bias_relu(a, w_aug):
        # a:     (Ci, HW) f32, flattened activation
        # w_aug: (Co, 9*Ci + 1) f32, bias folded in as the last column
        ci = a.shape[0]
        zpad = jnp.zeros((ci, PAD), dtype=f32)
        ap = jnp.concatenate([zpad, a, zpad], axis=1)        # (Ci, HW + 2*PAD)
        blocks = []
        for ky in (-1, 0, 1):            # vertical tap offset
            for kx in (-1, 0, 1):        # horizontal tap offset
                s = ky * W + kx          # shift in flattened (h*W + w) space
                t = ap[:, PAD + s:PAD + s + HW]              # (Ci, HW), zero-filled OOB
                if kx == 1:
                    t = jnp.where(not_last_col, t, 0.0)
                elif kx == -1:
                    t = jnp.where(not_first_col, t, 0.0)
                blocks.append(t)
        blocks.append(jnp.ones((1, HW), dtype=f32))          # bias row
        patches = jnp.concatenate(blocks, axis=0)            # (9*Ci + 1, HW) im2col
        y = jnp.dot(w_aug, patches, preferred_element_type=f32)   # (Co, HW)
        return jnp.maximum(y, 0.0)

    h1 = conv3x3_bias_relu(u, w1_ref[...])                   # (Cmid, HW), stays in VMEM
    y2 = conv3x3_bias_relu(h1, w2_ref[...])                  # (Cout, HW)
    o_ref[0] = y2.astype(o_ref.dtype)                        # lane-dense store


# ----------------------------------------------------------------------------
# BasicDecoderBlock forward (public wrapper, NCHW in / NCHW out).
# ----------------------------------------------------------------------------
def basic_decoder_block(x, x_trace, params):
    B, cin, H0, W0 = x.shape
    cskip = x_trace.shape[1]
    C = cin + cskip
    H, W = 2 * H0, 2 * W0
    HW = H * W

    w1, b1, w2, b2 = params["w1"], params["b1"], params["w2"], params["b2"]
    cmid, cout = w1.shape[-1], w2.shape[-1]
    assert w1.shape == (3, 3, C, cmid) and w2.shape == (3, 3, cmid, cout)
    assert HW % 128 == 0, "flattened (2H)*(2W) must be lane aligned"

    # NCHW -> (B, C, H0*W0): metadata-only reshape, no relayout / extra HBM copy.
    xf = x.reshape(B, cin, H0 * W0)
    xsf = x_trace.reshape(B, cskip, H0 * W0)

    # Upsample as a matmul: u_flat = x_flat @ kron(Uh, Uw)^T  (entries exact).
    kt = jnp.asarray(np.kron(_upsample_matrix(H0), _upsample_matrix(W0)).T)  # (H0*W0, HW)

    # Conv weights HWIO -> (Cout, 9*Cin) matching the (tap, channel) patch order,
    # with the bias folded in as the last column.
    def pack(w, b):
        co = w.shape[-1]
        m = jnp.transpose(w, (3, 0, 1, 2)).reshape(co, -1)        # (Co, 9*Ci)
        return jnp.concatenate([m, b.reshape(co, 1)], axis=1).astype(jnp.float32)

    w1m = pack(w1, b1)            # (Cmid, 9*C + 1)
    w2m = pack(w2, b2)            # (Cout, 9*Cmid + 1)

    kernel = functools.partial(_decoder_kernel, H=H, W=W, cin=cin, cskip=cskip)

    out = pl.pallas_call(
        kernel,
        out_shape=jax.ShapeDtypeStruct((B, cout, HW), x.dtype),
        grid=(B,),
        in_specs=[
            pl.BlockSpec((1, cin, H0 * W0), lambda b: (b, 0, 0)),
            pl.BlockSpec((1, cskip, H0 * W0), lambda b: (b, 0, 0)),
            pl.BlockSpec((H0 * W0, HW), lambda b: (0, 0)),      # constant -> DMA'd once
            pl.BlockSpec(w1m.shape, lambda b: (0, 0)),
            pl.BlockSpec(w2m.shape, lambda b: (0, 0)),
        ],
        out_specs=pl.BlockSpec((1, cout, HW), lambda b: (b, 0, 0)),
        scratch_shapes=[pltpu.VMEM((C, H0 * W0), jnp.float32)],   # concat staging
        compiler_params=pltpu.CompilerParams(
            dimension_semantics=("parallel",)),   # B=2 -> one batch elem per TC on v7x
    )(xf, xsf, kt, w1m, w2m)

    # (B, Cout, H*W) is already channel-major (NCHW): just unflatten spatial.
    return out.reshape(B, cout, H, W)


# ----------------------------------------------------------------------------
# Independent pure-JAX reference (gather+lerp upsample + lax.conv) for checking.
# ----------------------------------------------------------------------------
def _upsample2x_ref(a):
    def up1(v, axis):
        n = v.shape[axis]
        dst = jnp.arange(2 * n, dtype=jnp.float32)
        src = jnp.maximum((dst + 0.5) * 0.5 - 0.5, 0.0)
        i0 = jnp.floor(src).astype(jnp.int32)
        i1 = jnp.minimum(i0 + 1, n - 1)
        f = src - i0.astype(jnp.float32)
        shape = [1] * v.ndim
        shape[axis] = 2 * n
        f = f.reshape(shape)
        return jnp.take(v, i0, axis=axis) * (1.0 - f) + jnp.take(v, i1, axis=axis) * f
    return up1(up1(a, 2), 3)


def _reference(x, x_trace, params):
    xc = jnp.concatenate([x, x_trace], axis=1)
    xu = _upsample2x_ref(xc)

    def conv(a, w, b):
        y = jax.lax.conv_general_dilated(
            a, w, window_strides=(1, 1), padding="SAME",
            dimension_numbers=("NCHW", "HWIO", "NCHW"),
            precision=jax.lax.Precision.HIGHEST)
        return jnp.maximum(y + b[None, :, None, None], 0.0)

    h = conv(xu, params["w1"], params["b1"])
    return conv(h, params["w2"], params["b2"])


if __name__ == "__main__":
    B, Cin, Cskip, Cmid, Cout, H0, W0 = 2, 4, 4, 8, 8, 16, 16

    key = jax.random.PRNGKey(0)
    k1, k2, k3, k4, k5, k6 = jax.random.split(key, 6)

    x = jax.random.normal(k1, (B, Cin, H0, W0), jnp.float32)
    x_trace = jax.random.normal(k2, (B, Cskip, H0, W0), jnp.float32)

    fan1 = 9 * (Cin + Cskip)
    fan2 = 9 * Cmid
    params = {
        "w1": jax.random.normal(k3, (3, 3, Cin + Cskip, Cmid), jnp.float32)
              * (2.0 / fan1) ** 0.5,
        "b1": jax.random.normal(k4, (Cmid,), jnp.float32) * 0.05,
        "w2": jax.random.normal(k5, (3, 3, Cmid, Cout), jnp.float32)
              * (2.0 / fan2) ** 0.5,
        "b2": jax.random.normal(k6, (Cout,), jnp.float32) * 0.05,
    }

    out = jax.block_until_ready(jax.jit(basic_decoder_block)(x, x_trace, params))
    assert out.shape == (B, Cout, 2 * H0, 2 * W0), out.shape

    ref = jax.block_until_ready(_reference(x, x_trace, params))
    max_err = float(jnp.max(jnp.abs(out - ref)))
    # Tolerance leaves headroom for MXU reduced-precision f32 matmul passes;
    # any structural bug (wrong tap/mask/bias/upsample weights) is >= ~0.1.
    assert max_err < 5e-2, f"mismatch vs reference: {max_err}"

    print("KERNEL_OK")
</pallas_src>

<mosaic_0001>
module attributes {stable_mosaic.version = 11 : i64} {
  func.func @_decoder_kernel(%arg0: i32, %arg1: memref<1x4x256xf32, #tpu.memory_space<vmem>>, %arg2: memref<1x4x256xf32, #tpu.memory_space<vmem>>, %arg3: memref<256x1024xf32, #tpu.memory_space<vmem>>, %arg4: memref<8x73xf32, #tpu.memory_space<vmem>>, %arg5: memref<8x73xf32, #tpu.memory_space<vmem>>, %arg6: memref<1x8x1024xf32, #tpu.memory_space<vmem>>, %arg7: memref<8x256xf32, #tpu.memory_space<vmem>>) attributes {dimension_semantics = [#tpu.dimension_semantics<parallel>], iteration_bounds = array<i64: 2>, scalar_prefetch = 0 : i64, scratch_operands = 1 : i64, tpu.core_type = #tpu.core_type<tc>, window_params = [{transform_indices = @transform_0, window_bounds = array<i64: 1, 4, 256>}, {transform_indices = @transform_1, window_bounds = array<i64: 1, 4, 256>}, {pipeline_mode = #tpu.pipeline_mode<synchronous>, transform_indices = @transform_2, window_bounds = array<i64: 256, 1024>}, {pipeline_mode = #tpu.pipeline_mode<synchronous>, transform_indices = @transform_3, window_bounds = array<i64: 8, 73>}, {pipeline_mode = #tpu.pipeline_mode<synchronous>, transform_indices = @transform_4, window_bounds = array<i64: 8, 73>}, {transform_indices = @transform_5, window_bounds = array<i64: 1, 8, 1024>}]} {
    %c0 = arith.constant 0 : index
    %c0_0 = arith.constant 0 : index
    %c0_1 = arith.constant 0 : index
    %0 = vector.load %arg1[%c0, %c0_0, %c0_1] : memref<1x4x256xf32, #tpu.memory_space<vmem>>, vector<1x4x256xf32>
    %1 = vector.shape_cast %0 : vector<1x4x256xf32> to vector<4x256xf32>
    %c0_2 = arith.constant 0 : index
    %c0_3 = arith.constant 0 : index
    %2 = vector.load %arg7[%c0_2, %c0_3] : memref<8x256xf32, #tpu.memory_space<vmem>>, vector<4x256xf32>
    tpu.vector_store %arg7[%c0_2, %c0_3], %1 {strides = array<i32>} : memref<8x256xf32, #tpu.memory_space<vmem>>, vector<4x256xf32>,
    %c0_4 = arith.constant 0 : index
    %c0_5 = arith.constant 0 : index
    %c0_6 = arith.constant 0 : index
    %3 = vector.load %arg2[%c0_4, %c0_5, %c0_6] : memref<1x4x256xf32, #tpu.memory_space<vmem>>, vector<1x4x256xf32>
    %4 = vector.shape_cast %3 : vector<1x4x256xf32> to vector<4x256xf32>
    %c4 = arith.constant 4 : index
    %c0_7 = arith.constant 0 : index
    %5 = vector.load %arg7[%c4, %c0_7] : memref<8x256xf32, #tpu.memory_space<vmem>>, vector<4x256xf32>
    tpu.vector_store %arg7[%c4, %c0_7], %4 {strides = array<i32>} : memref<8x256xf32, #tpu.memory_space<vmem>>, vector<4x256xf32>,
    %c0_8 = arith.constant 0 : index
    %c0_9 = arith.constant 0 : index
    %6 = vector.load %arg7[%c0_8, %c0_9] : memref<8x256xf32, #tpu.memory_space<vmem>>, vector<8x256xf32>
    %c0_10 = arith.constant 0 : index
    %c0_11 = arith.constant 0 : index
    %7 = vector.load %arg3[%c0_10, %c0_11] : memref<256x1024xf32, #tpu.memory_space<vmem>>, vector<256x1024xf32>
    %cst = arith.constant dense<0.000000e+00> : vector<8x1024xf32>
    %8 = tpu.matmul %6, %7, %cst {dimension_numbers = #tpu.dot_dimension_numbers<[1], [0], [0], [1], [0, 0, 1, 1], [], []>} : vector<8x256xf32>, vector<256x1024xf32>, vector<8x1024xf32> -> vector<8x1024xf32>
    %9 = tpu.iota {dimensions = array<i32: 1>} : vector<1x1024xi32>
    %c32_i32 = arith.constant 32 : i32
    %c0_i32 = arith.constant 0 : i32
    %10 = arith.cmpi eq, %c32_i32, %c0_i32 : i32
    %c1_i32 = arith.constant 1 : i32
    %11 = arith.select %10, %c1_i32, %c32_i32 : i32
    %12 = vector.broadcast %11 : i32 to vector<1x1024xi32>
    %13 = arith.remsi %9, %12 : vector<1x1024xi32>
    %c0_i32_12 = arith.constant 0 : i32
    %14 = vector.broadcast %c0_i32_12 : i32 to vector<1x1024xi32>
    %15 = arith.cmpi ne, %13, %14 : vector<1x1024xi32>
    %c0_i32_13 = arith.constant 0 : i32
    %16 = vector.broadcast %c0_i32_13 : i32 to vector<1x1024xi32>
    %17 = arith.cmpi slt, %13, %16 : vector<1x1024xi32>
    %c0_i32_14 = arith.constant 0 : i32
    %18 = arith.cmpi slt, %11, %c0_i32_14 : i32
    %19 = vector.broadcast %18 : i1 to vector<1x1024xi1>
    %20 = vector.broadcast %19 : vector<1x1024xi1> to vector<1x1024xi1>
    %21 = arith.xori %17, %20 : vector<1x1024xi1>
    %22 = arith.andi %21, %15 : vector<1x1024xi1>
    %23 = vector.broadcast %11 : i32 to vector<1x1024xi32>
    %24 = arith.addi %13, %23 : vector<1x1024xi32>
    %25 = arith.select %22, %24, %13 : vector<1x1024xi1>, vector<1x1024xi32>
    %c0_i32_15 = arith.constant 0 : i32
    %26 = vector.broadcast %c0_i32_15 : i32 to vector<1x1024xi32>
    %27 = arith.cmpi ne, %25, %26 : vector<1x1024xi32>
    %c31_i32 = arith.constant 31 : i32
    %28 = vector.broadcast %c31_i32 : i32 to vector<1x1024xi32>
    %29 = arith.cmpi ne, %25, %28 : vector<1x1024xi32>
    %c0_16 = arith.constant 0 : index
    %c0_17 = arith.constant 0 : index
    %30 = vector.load %arg4[%c0_16, %c0_17] : memref<8x73xf32, #tpu.memory_space<vmem>>, vector<8x73xf32>
    %cst_18 = arith.constant 0.000000e+00 : f32
    %31 = vector.broadcast %cst_18 : f32 to vector<8x128xf32>
    %32 = tpu.concatenate %31, %8, %31 in 1 : vector<8x128xf32>, vector<8x1024xf32>, vector<8x128xf32> -> vector<8x1280xf32>
    %33 = vector.extract_strided_slice %32 {offsets = [0, 95], sizes = [8, 1024], strides = [1, 1]} : vector<8x1280xf32> to vector<8x1024xf32>
    %cst_19 = arith.constant 0.000000e+00 : f32
    %34 = vector.shape_cast %27 : vector<1x1024xi1> to vector<1x1024xi1>
    %35 = vector.broadcast %34 : vector<1x1024xi1> to vector<8x1024xi1>
    %36 = vector.broadcast %cst_19 : f32 to vector<8x1024xf32>
    %37 = arith.select %35, %33, %36 : vector<8x1024xi1>, vector<8x1024xf32>
    %38 = vector.extract_strided_slice %32 {offsets = [0, 96], sizes = [8, 1024], strides = [1, 1]} : vector<8x1280xf32> to vector<8x1024xf32>
    %39 = vector.extract_strided_slice %32 {offsets = [0, 97], sizes = [8, 1024], strides = [1, 1]} : vector<8x1280xf32> to vector<8x1024xf32>
    %cst_20 = arith.constant 0.000000e+00 : f32
    %40 = vector.shape_cast %29 : vector<1x1024xi1> to vector<1x1024xi1>
    %41 = vector.broadcast %40 : vector<1x1024xi1> to vector<8x1024xi1>
    %42 = vector.broadcast %cst_20 : f32 to vector<8x1024xf32>
    %43 = arith.select %41, %39, %42 : vector<8x1024xi1>, vector<8x1024xf32>
    %44 = vector.extract_strided_slice %32 {offsets = [0, 127], sizes = [8, 1024], strides = [1, 1]} : vector<8x1280xf32> to vector<8x1024xf32>
    %cst_21 = arith.constant 0.000000e+00 : f32
    %45 = vector.shape_cast %27 : vector<1x1024xi1> to vector<1x1024xi1>
    %46 = vector.broadcast %45 : vector<1x1024xi1> to vector<8x1024xi1>
    %47 = vector.broadcast %cst_21 : f32 to vector<8x1024xf32>
    %48 = arith.select %46, %44, %47 : vector<8x1024xi1>, vector<8x1024xf32>
    %49 = vector.extract_strided_slice %32 {offsets = [0, 128], sizes = [8, 1024], strides = [1, 1]} : vector<8x1280xf32> to vector<8x1024xf32>
    %50 = vector.extract_strided_slice %32 {offsets = [0, 129], sizes = [8, 1024], strides = [1, 1]} : vector<8x1280xf32> to vector<8x1024xf32>
    %cst_22 = arith.constant 0.000000e+00 : f32
    %51 = vector.shape_cast %29 : vector<1x1024xi1> to vector<1x1024xi1>
    %52 = vector.broadcast %51 : vector<1x1024xi1> to vector<8x1024xi1>
    %53 = vector.broadcast %cst_22 : f32 to vector<8x1024xf32>
    %54 = arith.select %52, %50, %53 : vector<8x1024xi1>, vector<8x1024xf32>
    %55 = vector.extract_strided_slice %32 {offsets = [0, 159], sizes = [8, 1024], strides = [1, 1]} : vector<8x1280xf32> to vector<8x1024xf32>
    %cst_23 = arith.constant 0.000000e+00 : f32
    %56 = vector.shape_cast %27 : vector<1x1024xi1> to vector<1x1024xi1>
    %57 = vector.broadcast %56 : vector<1x1024xi1> to vector<8x1024xi1>
    %58 = vector.broadcast %cst_23 : f32 to vector<8x1024xf32>
    %59 = arith.select %57, %55, %58 : vector<8x1024xi1>, vector<8x1024xf32>
    %60 = vector.extract_strided_slice %32 {offsets = [0, 160], sizes = [8, 1024], strides = [1, 1]} : vector<8x1280xf32> to vector<8x1024xf32>
    %61 = vector.extract_strided_slice %32 {offsets = [0, 161], sizes = [8, 1024], strides = [1, 1]} : vector<8x1280xf32> to vector<8x1024xf32>
    %cst_24 = arith.constant 0.000000e+00 : f32
    %62 = vector.shape_cast %29 : vector<1x1024xi1> to vector<1x1024xi1>
    %63 = vector.broadcast %62 : vector<1x1024xi1> to vector<8x1024xi1>
    %64 = vector.broadcast %cst_24 : f32 to vector<8x1024xf32>
    %65 = arith.select %63, %61, %64 : vector<8x1024xi1>, vector<8x1024xf32>
    %cst_25 = arith.constant 1.000000e+00 : f32
    %66 = vector.broadcast %cst_25 : f32 to vector<1x1024xf32>
    %67 = tpu.concatenate %37, %38, %43, %48, %49, %54, %59, %60, %65, %66 in 0 : vector<8x1024xf32>, vector<8x1024xf32>, vector<8x1024xf32>, vector<8x1024xf32>, vector<8x1024xf32>, vector<8x1024xf32>, vector<8x1024xf32>, vector<8x1024xf32>, vector<8x1024xf32>, vector<1x1024xf32> -> vector<73x1024xf32>
    %cst_26 = arith.constant dense<0.000000e+00> : vector<8x1024xf32>
    %68 = tpu.matmul %30, %67, %cst_26 {dimension_numbers = #tpu.dot_dimension_numbers<[1], [0], [0], [1], [0, 0, 1, 1], [], []>} : vector<8x73xf32>, vector<73x1024xf32>, vector<8x1024xf32> -> vector<8x1024xf32>
    %cst_27 = arith.constant 0.000000e+00 : f32
    %69 = vector.broadcast %cst_27 : f32 to vector<8x1024xf32>
    %70 = arith.maximumf %68, %69 : vector<8x1024xf32>
    %c0_28 = arith.constant 0 : index
    %c0_29 = arith.constant 0 : index
    %71 = vector.load %arg5[%c0_28, %c0_29] : memref<8x73xf32, #tpu.memory_space<vmem>>, vector<8x73xf32>
    %cst_30 = arith.constant 0.000000e+00 : f32
    %72 = vector.broadcast %cst_30 : f32 to vector<8x128xf32>
    %73 = tpu.concatenate %72, %70, %72 in 1 : vector<8x128xf32>, vector<8x1024xf32>, vector<8x128xf32> -> vector<8x1280xf32>
    %74 = vector.extract_strided_slice %73 {offsets = [0, 95], sizes = [8, 1024], strides = [1, 1]} : vector<8x1280xf32> to vector<8x1024xf32>
    %cst_31 = arith.constant 0.000000e+00 : f32
    %75 = vector.shape_cast %27 : vector<1x1024xi1> to vector<1x1024xi1>
    %76 = vector.broadcast %75 : vector<1x1024xi1> to vector<8x1024xi1>
    %77 = vector.broadcast %cst_31 : f32 to vector<8x1024xf32>
    %78 = arith.select %76, %74, %77 : vector<8x1024xi1>, vector<8x1024xf32>
    %79 = vector.extract_strided_slice %73 {offsets = [0, 96], sizes = [8, 1024], strides = [1, 1]} : vector<8x1280xf32> to vector<8x1024xf32>
    %80 = vector.extract_strided_slice %73 {offsets = [0, 97], sizes = [8, 1024], strides = [1, 1]} : vector<8x1280xf32> to vector<8x1024xf32>
    %cst_32 = arith.constant 0.000000e+00 : f32
    %81 = vector.shape_cast %29 : vector<1x1024xi1> to vector<1x1024xi1>
    %82 = vector.broadcast %81 : vector<1x1024xi1> to vector<8x1024xi1>
    %83 = vector.broadcast %cst_32 : f32 to vector<8x1024xf32>
    %84 = arith.select %82, %80, %83 : vector<8x1024xi1>, vector<8x1024xf32>
    %85 = vector.extract_strided_slice %73 {offsets = [0, 127], sizes = [8, 1024], strides = [1, 1]} : vector<8x1280xf32> to vector<8x1024xf32>
    %cst_33 = arith.constant 0.000000e+00 : f32
    %86 = vector.shape_cast %27 : vector<1x1024xi1> to vector<1x1024xi1>
    %87 = vector.broadcast %86 : vector<1x1024xi1> to vector<8x1024xi1>
    %88 = vector.broadcast %cst_33 : f32 to vector<8x1024xf32>
    %89 = arith.select %87, %85, %88 : vector<8x1024xi1>, vector<8x1024xf32>
    %90 = vector.extract_strided_slice %73 {offsets = [0, 128], sizes = [8, 1024], strides = [1, 1]} : vector<8x1280xf32> to vector<8x1024xf32>
    %91 = vector.extract_strided_slice %73 {offsets = [0, 129], sizes = [8, 1024], strides = [1, 1]} : vector<8x1280xf32> to vector<8x1024xf32>
    %cst_34 = arith.constant 0.000000e+00 : f32
    %92 = vector.shape_cast %29 : vector<1x1024xi1> to vector<1x1024xi1>
    %93 = vector.broadcast %92 : vector<1x1024xi1> to vector<8x1024xi1>
    %94 = vector.broadcast %cst_34 : f32 to vector<8x1024xf32>
    %95 = arith.select %93, %91, %94 : vector<8x1024xi1>, vector<8x1024xf32>
    %96 = vector.extract_strided_slice %73 {offsets = [0, 159], sizes = [8, 1024], strides = [1, 1]} : vector<8x1280xf32> to vector<8x1024xf32>
    %cst_35 = arith.constant 0.000000e+00 : f32
    %97 = vector.shape_cast %27 : vector<1x1024xi1> to vector<1x1024xi1>
    %98 = vector.broadcast %97 : vector<1x1024xi1> to vector<8x1024xi1>
    %99 = vector.broadcast %cst_35 : f32 to vector<8x1024xf32>
    %100 = arith.select %98, %96, %99 : vector<8x1024xi1>, vector<8x1024xf32>
    %101 = vector.extract_strided_slice %73 {offsets = [0, 160], sizes = [8, 1024], strides = [1, 1]} : vector<8x1280xf32> to vector<8x1024xf32>
    %102 = vector.extract_strided_slice %73 {offsets = [0, 161], sizes = [8, 1024], strides = [1, 1]} : vector<8x1280xf32> to vector<8x1024xf32>
    %cst_36 = arith.constant 0.000000e+00 : f32
    %103 = vector.shape_cast %29 : vector<1x1024xi1> to vector<1x1024xi1>
    %104 = vector.broadcast %103 : vector<1x1024xi1> to vector<8x1024xi1>
    %105 = vector.broadcast %cst_36 : f32 to vector<8x1024xf32>
    %106 = arith.select %104, %102, %105 : vector<8x1024xi1>, vector<8x1024xf32>
    %cst_37 = arith.constant 1.000000e+00 : f32
    %107 = vector.broadcast %cst_37 : f32 to vector<1x1024xf32>
    %108 = tpu.concatenate %78, %79, %84, %89, %90, %95, %100, %101, %106, %107 in 0 : vector<8x1024xf32>, vector<8x1024xf32>, vector<8x1024xf32>, vector<8x1024xf32>, vector<8x1024xf32>, vector<8x1024xf32>, vector<8x1024xf32>, vector<8x1024xf32>, vector<8x1024xf32>, vector<1x1024xf32> -> vector<73x1024xf32>
    %cst_38 = arith.constant dense<0.000000e+00> : vector<8x1024xf32>
    %109 = tpu.matmul %71, %108, %cst_38 {dimension_numbers = #tpu.dot_dimension_numbers<[1], [0], [0], [1], [0, 0, 1, 1], [], []>} : vector<8x73xf32>, vector<73x1024xf32>, vector<8x1024xf32> -> vector<8x1024xf32>
    %cst_39 = arith.constant 0.000000e+00 : f32
    %110 = vector.broadcast %cst_39 : f32 to vector<8x1024xf32>
    %111 = arith.maximumf %109, %110 : vector<8x1024xf32>
    %c0_40 = arith.constant 0 : index
    %c0_41 = arith.constant 0 : index
    %c0_42 = arith.constant 0 : index
    %112 = vector.load %arg6[%c0_40, %c0_41, %c0_42] : memref<1x8x1024xf32, #tpu.memory_space<vmem>>, vector<1x8x1024xf32>
    %113 = vector.shape_cast %112 : vector<1x8x1024xf32> to vector<8x1024xf32>
    %114 = vector.shape_cast %111 : vector<8x1024xf32> to vector<1x8x1024xf32>
    tpu.vector_store %arg6[%c0_40, %c0_41, %c0_42], %114 {strides = array<i32>} : memref<1x8x1024xf32, #tpu.memory_space<vmem>>, vector<1x8x1024xf32>,
    return
  }
  func.func @transform_0(%arg0: i32) -> (i32, i32, i32) {
    %c0_i32 = arith.constant 0 : i32
    %c0_i32_0 = arith.constant 0 : i32
    %c0_i32_1 = arith.constant 0 : i32
    return %arg0, %c0_i32, %c0_i32_0 : i32, i32, i32
  }
  func.func @transform_1(%arg0: i32) -> (i32, i32, i32) {
    %c0_i32 = arith.constant 0 : i32
    %c0_i32_0 = arith.constant 0 : i32
    %c0_i32_1 = arith.constant 0 : i32
    return %arg0, %c0_i32, %c0_i32_0 : i32, i32, i32
  }
  func.func @transform_2(%arg0: i32) -> (i32, i32) {
    %c0_i32 = arith.constant 0 : i32
    %c0_i32_0 = arith.constant 0 : i32
    %c0_i32_1 = arith.constant 0 : i32
    return %c0_i32, %c0_i32_0 : i32, i32
  }
  func.func @transform_3(%arg0: i32) -> (i32, i32) {
    %c0_i32 = arith.constant 0 : i32
    %c0_i32_0 = arith.constant 0 : i32
    %c0_i32_1 = arith.constant 0 : i32
    return %c0_i32, %c0_i32_0 : i32, i32
  }
  func.func @transform_4(%arg0: i32) -> (i32, i32) {
    %c0_i32 = arith.constant 0 : i32
    %c0_i32_0 = arith.constant 0 : i32
    %c0_i32_1 = arith.constant 0 : i32
    return %c0_i32, %c0_i32_0 : i32, i32
  }
  func.func @transform_5(%arg0: i32) -> (i32, i32, i32) {
    %c0_i32 = arith.constant 0 : i32
    %c0_i32_0 = arith.constant 0 : i32
    %c0_i32_1 = arith.constant 0 : i32
    return %arg0, %c0_i32, %c0_i32_0 : i32, i32, i32
  }
}

</mosaic_0001>

<bundles_post_ra>
// kernel: basic_decoder_block.1
= control target key start
LH: loop header
LB: loop body
LE: loop exit
PB: predicated region body
PF: predicated region fallthrough
CT: control target
= control target key end

     0   :  { %10 = vsyncpa [#allocation4], 0  ;;  %s2552_s18 = smov 0   ;;  %s3596_s0 = inlined_call_operand.vmem [shape: f32[2,4,256], index: 0, kind: input, shape index: {}]   ;;  %s3597_s1 = inlined_call_operand.vmem [shape: f32[2,4,256], index: 1, kind: input, shape index: {}]   ;;  %s3598_s2 = inlined_call_operand.hbm [shape: f32[256,1024], index: 2, kind: input, shape index: {}]   ;;  %s3599_s3 = inlined_call_operand.vmem [shape: f32[8,73], index: 3, kind: input, shape index: {}]   ;;  %s3600_s4 = inlined_call_operand.vmem [shape: f32[8,73], index: 4, kind: input, shape index: {}]   ;;  %s3601_s5 = inlined_call_operand.vmem [shape: f32[2,8,1024], index: 5, kind: output, shape index: {}]  }
   0x1 LB: > { %s2558_s19 = sadd.s32 4294967295, %s2507_s18   ;;  %p2302_p0 = scmp.ge.s32.totalorder %s2507_s18, 1  ;;  %s2507_s18 = sphi %s2552_s18, %s16_s18  }
   0x2   : > { %p162_p1 = scmp.lt.s32.totalorder %s2507_s18, 3  ;;  %s2509_s20 = smov [#allocation3]  }
   0x3   : > { %s174_s21 = sshll.u32 %s2509_s20, 4  ;;  %p2446_p3 = scmp.eq.s32.totalorder %s2558_s19, 0  ;;  %s175_s21 = int_to_ptr.vmem [resolvable:$true] %s174_s21 }
   0x4   : > { %p2562_p2 = pnand %p2302_p0, %p162_p1  ;;  %s2482_s23 = scalar_lea.vmem %s175_s21, 32768 }
   0x5   : > { %p2483_p7 = scmp.ne.s32.totalorder %s175_s21, %s2482_s23  ;;  %p2490_p10 = scmp.lt.s32.totalorder %s175_s21, %s175_s21 }
   0x6   : > { %p2442_p4 = pneg %p2562_p2  ;;  %p2491_p11 = scmp.lt.s32.totalorder %s2482_s23, %s2482_s23 }
   0x8   : > { %p2443_p5 = pnand %p2446_p3, %p2442_p4  ;;  %p2492_p12 = por %p2491_p11, %p2490_p10 }
   0xa   : > { %p2473_p6 = pneg %p2443_p5 }
   0xc   : > { %p2485_p8 = pnand %p2483_p7, %p2473_p6 }
   0xe   : > { %p2486_p9 = pneg %p2485_p8 }
  0x10   : > { %p2493_p13 = pnand %p2492_p12, %p2486_p9 }
  0x12   : > { %2496 = shalt.err (!%p2493_p13)
}
  0x13   : > { %s2510_s24 = smov 1024   ;;  %s2511_s25 = smov 64  }
  0x14   : > { %2445 = dma.hbm_to_vmem [thread:$0]  (!%p2443_p5), %s3598_s2, 32768, %s175_s21, [#allocation4], %s2510_s24, %s2510_s24, %s2511_s25  }
  0x15   : > { %212 = sbr.rel (%p2562_p2) target bundleno = 1109 (0x455), region = 40 }
  0x1a   : > { %2502 = dma.done.wait (%p2446_p3), [#allocation4], 32768  }
  0x1b   : > { %2504 = vsyncadd (%p2446_p3), [#allocation4], 4294934528  ;;  %v395_v0 = vld [vmem:[#allocation3 + $0x3c8] sm:$0xff]  ;;  %v397_v1 = vld [vmem:[#allocation3 + $0x3d8] sm:$0xff]  ;;  %p245_p0 = scmp.lt.s32.totalorder %s2558_s19, 1  ;;  %s2513_s10 = smov 31  }
  0x1c   : > { %v394_v2 = vld [vmem:[#allocation3 + $0x3c0] sm:$0xff]  ;;  %530 = vmatprep.subr.mxu0 %v395_v0  ;;  %601 = vmatprep.subr.mxu1 %v397_v1  ;;  %v396_v3 = vld [vmem:[#allocation3 + $0x3d0] sm:$0xff]  ;;  %v387_v4 = vld [vmem:[#allocation3 + $0x388] sm:$0xff]  ;;  %s2514_s11 = smov 1   ;;  %s2515_s12 = smov 33   ;;  %vm3602_vm0 = vcmask 1040384  }
  0x1d   : > { %v389_v5 = vld [vmem:[#allocation3 + $0x398] sm:$0xff]  ;;  %531 = vmatpush1.msra.mxu0 %v394_v2  ;;  %602 = vmatpush1.msra.mxu1 %v396_v3  ;;  %v386_v6 = vld [vmem:[#allocation3 + $0x380] sm:$0xff]  ;;  %v388_v7 = vld [vmem:[#allocation3 + $0x390] sm:$0xff]  ;;  %s3773_s19 = smov (!%p245_p0, %s2558_s19), 1  ;;  %s2516_s13 = smov 32   ;;  %vm3606_vm1 = vcmask 777216  }
  0x1e   : > { %v379_v8 = vld [vmem:[#allocation3 + $0x348] sm:$0xff]  ;;  %532 = vmatprep.subr.mxu0 %v387_v4  ;;  %603 = vmatprep.subr.mxu1 %v389_v5  ;;  %v381_v9 = vld [vmem:[#allocation3 + $0x358] sm:$0xff]  ;;  %v378_v10 = vld [vmem:[#allocation3 + $0x340] sm:$0xff]  ;;  %s2435_s28 = sshll.u32 %s3773_s19, 3  ;;  %s2517_s14 = smov 95   ;;  %vm3607_vm4 = vcmask 785408  }
  0x1f   : > { %v380_v11 = vld [vmem:[#allocation3 + $0x350] sm:$0xff]  ;;  %533 = vmatpush1.msra.mxu0 %v386_v6  ;;  %604 = vmatpush1.msra.mxu1 %v388_v7  ;;  %v371_v12 = vld [vmem:[#allocation3 + $0x308] sm:$0xff]  ;;  %v373_v13 = vld [vmem:[#allocation3 + $0x318] sm:$0xff]  ;;  %s249_s6 = scalar_lea.vmem %s3596_s0, %s2435_s28  ;;  %s254_s9 = scalar_lea.vmem %s3597_s1, %s2435_s28  ;;  %vm3604_vm5 = vcmask 793600   ;;  %vm3611_vm7 = vcmask 1039360   ;;  %vm3609_vm9 = vcmask 7168  }
  0x20   : > { %534 = vmatprep.subr.mxu0 %v379_v8  ;;  %605 = vmatprep.subr.mxu1 %v381_v9  ;;  %v370_v14 = vld [vmem:[#allocation3 + $0x300] sm:$0xff]  ;;  %v372_v15 = vld [vmem:[#allocation3 + $0x310] sm:$0xff]  ;;  %v363_v16 = vld [vmem:[#allocation3 + $0x2c8] sm:$0xff]  ;;  %s2518_s15 = smov 96   ;;  %s2519_s16 = smov 97   ;;  %vm3608_vm10 = vcmask 252928  }
  0x21   : > { %535 = vmatpush1.msra.mxu0 %v378_v10  ;;  %606 = vmatpush1.msra.mxu1 %v380_v11  ;;  %v365_v17 = vld [vmem:[#allocation3 + $0x2d8] sm:$0xff]  ;;  %v362_v18 = vld [vmem:[#allocation3 + $0x2c0] sm:$0xff]  ;;  %v364_v19 = vld [vmem:[#allocation3 + $0x2d0] sm:$0xff]  ;;  %s2520_s17 = smov 127   ;;  %vm3610_vm11 = vcmask 261120   ;;  %vm3605_vm12 = vcmask 269312  }
  0x22   : > { %536 = vmatprep.subr.mxu0 %v371_v12  ;;  %607 = vmatprep.subr.mxu1 %v373_v13  ;;  %v355_v20 = vld [vmem:[#allocation3 + $0x288] sm:$0xff]  ;;  %v357_v21 = vld [vmem:[#allocation3 + $0x298] sm:$0xff]  ;;  %v354_v22 = vld [vmem:[#allocation3 + $0x280] sm:$0xff]  ;;  %vm3603_vm13 = vcmask 596992   ;;  %s2437_s24 = sshll.u32 %s3773_s19, 6 }
  0x23   : > { %537 = vmatpush1.msra.mxu0 %v370_v14  ;;  %608 = vmatpush1.msra.mxu1 %v372_v15  ;;  %v356_v23 = vld [vmem:[#allocation3 + $0x290] sm:$0xff]  ;;  %v347_v24 = vld [vmem:[#allocation3 + $0x248] sm:$0xff]  ;;  %v349_v25 = vld [vmem:[#allocation3 + $0x258] sm:$0xff]  ;;  %s259_s27 = scalar_lea.vmem %s3601_s5, %s2437_s24 }
  0x24   : > { %538 = vmatprep.subr.mxu0 %v363_v16  ;;  %609 = vmatprep.subr.mxu1 %v365_v17  ;;  %v346_v26 = vld [vmem:[#allocation3 + $0x240] sm:$0xff]  ;;  %v348_v27 = vld [vmem:[#allocation3 + $0x250] sm:$0xff]  ;;  %v339_v28 = vld [vmem:[#allocation3 + $0x208] sm:$0xff] }
  0x25   : > { %539 = vmatpush1.msra.mxu0 %v362_v18  ;;  %610 = vmatpush1.msra.mxu1 %v364_v19  ;;  %v341_v29 = vld [vmem:[#allocation3 + $0x218] sm:$0xff]  ;;  %v338_v30 = vld [vmem:[#allocation3 + $0x200] sm:$0xff]  ;;  %v340_v31 = vld [vmem:[#allocation3 + $0x210] sm:$0xff] }
  0x26   : > { %540 = vmatprep.subr.mxu0 %v355_v20  ;;  %611 = vmatprep.subr.mxu1 %v357_v21  ;;  %v331_v32 = vld [vmem:[#allocation3 + $0x1c8] sm:$0xff]  ;;  %v333_v33 = vld [vmem:[#allocation3 + $0x1d8] sm:$0xff]  ;;  %v330_v34 = vld [vmem:[#allocation3 + $0x1c0] sm:$0xff] }
  0x27   : > { %541 = vmatpush1.msra.mxu0 %v354_v22  ;;  %612 = vmatpush1.msra.mxu1 %v356_v23  ;;  %v332_v35 = vld [vmem:[#allocation3 + $0x1d0] sm:$0xff]  ;;  %v323_v36 = vld [vmem:[#allocation3 + $0x188] sm:$0xff]  ;;  %v325_v37 = vld [vmem:[#allocation3 + $0x198] sm:$0xff] }
  0x28   : > { %542 = vmatprep.subr.mxu0 %v347_v24  ;;  %613 = vmatprep.subr.mxu1 %v349_v25  ;;  %v322_v38 = vld [vmem:[#allocation3 + $0x180] sm:$0xff]  ;;  %v324_v39 = vld [vmem:[#allocation3 + $0x190] sm:$0xff]  ;;  %v315_v40 = vld [vmem:[#allocation3 + $0x148] sm:$0xff] }
  0x29   : > { %543 = vmatpush1.msra.mxu0 %v346_v26  ;;  %614 = vmatpush1.msra.mxu1 %v348_v27  ;;  %v317_v41 = vld [vmem:[#allocation3 + $0x158] sm:$0xff]  ;;  %v314_v42 = vld [vmem:[#allocation3 + $0x140] sm:$0xff]  ;;  %v316_v43 = vld [vmem:[#allocation3 + $0x150] sm:$0xff] }
  0x2a   : > { %544 = vmatprep.subr.mxu0 %v339_v28  ;;  %615 = vmatprep.subr.mxu1 %v341_v29  ;;  %v307_v44 = vld [vmem:[#allocation3 + $0x108] sm:$0xff]  ;;  %v309_v45 = vld [vmem:[#allocation3 + $0x118] sm:$0xff]  ;;  %v306_v46 = vld [vmem:[#allocation3 + $0x100] sm:$0xff] }
  0x2b   : > { %545 = vmatpush1.msra.mxu0 %v338_v30  ;;  %616 = vmatpush1.msra.mxu1 %v340_v31  ;;  %v308_v47 = vld [vmem:[#allocation3 + $0x110] sm:$0xff]  ;;  %v299_v48 = vld [vmem:[#allocation3 + $0xc8] sm:$0xff]  ;;  %v301_v49 = vld [vmem:[#allocation3 + $0xd8] sm:$0xff] }
  0x2c   : > { %546 = vmatprep.subr.mxu0 %v331_v32  ;;  %617 = vmatprep.subr.mxu1 %v333_v33  ;;  %v298_v50 = vld [vmem:[#allocation3 + $0xc0] sm:$0xff]  ;;  %v300_v51 = vld [vmem:[#allocation3 + $0xd0] sm:$0xff]  ;;  %v291_v52 = vld [vmem:[#allocation3 + $0x88] sm:$0xff] }
  0x2d   : > { %547 = vmatpush1.msra.mxu0 %v330_v34  ;;  %618 = vmatpush1.msra.mxu1 %v332_v35  ;;  %v293_v53 = vld [vmem:[#allocation3 + $0x98] sm:$0xff]  ;;  %v290_v54 = vld [vmem:[#allocation3 + $0x80] sm:$0xff]  ;;  %v292_v55 = vld [vmem:[#allocation3 + $0x90] sm:$0xff] }
  0x2e   : > { %548 = vmatprep.subr.mxu0 %v323_v36  ;;  %619 = vmatprep.subr.mxu1 %v325_v37  ;;  %v283_v56 = vld [vmem:[#allocation3 + $0x48] sm:$0xff]  ;;  %v285_v57 = vld [vmem:[#allocation3 + $0x58] sm:$0xff]  ;;  %v282_v58 = vld [vmem:[#allocation3 + $0x40] sm:$0xff] }
  0x2f   : > { %549 = vmatpush1.msra.mxu0 %v322_v38  ;;  %620 = vmatpush1.msra.mxu1 %v324_v39  ;;  %v284_v59 = vld [vmem:[#allocation3 + $0x50] sm:$0xff]  ;;  %v275_v60 = vld [vmem:[#allocation3 + $0x8] sm:$0xff]  ;;  %v277_v61 = vld [vmem:[#allocation3 + $0x18] sm:$0xff] }
  0x30   : > { %550 = vmatprep.subr.mxu0 %v315_v40  ;;  %621 = vmatprep.subr.mxu1 %v317_v41  ;;  %v274_v62 = vld [vmem:[#allocation3] sm:$0xff]  ;;  %v276_v63 = vld [vmem:[#allocation3 + $0x10] sm:$0xff]  ;;  %v523_v0 = vld [vmem:[#allocation3 + $0x7c8] sm:$0xff] }
  0x31   : > { %551 = vmatpush1.msra.mxu0 %v314_v42  ;;  %622 = vmatpush1.msra.mxu1 %v316_v43  ;;  %v525_v1 = vld [vmem:[#allocation3 + $0x7d8] sm:$0xff]  ;;  %v522_v2 = vld [vmem:[#allocation3 + $0x7c0] sm:$0xff]  ;;  %v524_v3 = vld [vmem:[#allocation3 + $0x7d0] sm:$0xff] }
  0x32   : > { %552 = vmatprep.subr.mxu0 %v307_v44  ;;  %623 = vmatprep.subr.mxu1 %v309_v45  ;;  %v515_v4 = vld [vmem:[#allocation3 + $0x788] sm:$0xff]  ;;  %v517_v5 = vld [vmem:[#allocation3 + $0x798] sm:$0xff]  ;;  %v514_v6 = vld [vmem:[#allocation3 + $0x780] sm:$0xff] }
  0x33   : > { %553 = vmatpush1.msra.mxu0 %v306_v46  ;;  %624 = vmatpush1.msra.mxu1 %v308_v47  ;;  %v516_v7 = vld [vmem:[#allocation3 + $0x790] sm:$0xff]  ;;  %v507_v8 = vld [vmem:[#allocation3 + $0x748] sm:$0xff]  ;;  %v509_v9 = vld [vmem:[#allocation3 + $0x758] sm:$0xff] }
  0x34   : > { %554 = vmatprep.subr.mxu0 %v299_v48  ;;  %625 = vmatprep.subr.mxu1 %v301_v49  ;;  %v506_v10 = vld [vmem:[#allocation3 + $0x740] sm:$0xff]  ;;  %v508_v11 = vld [vmem:[#allocation3 + $0x750] sm:$0xff]  ;;  %v499_v12 = vld [vmem:[#allocation3 + $0x708] sm:$0xff] }
  0x35   : > { %555 = vmatpush1.msra.mxu0 %v298_v50  ;;  %626 = vmatpush1.msra.mxu1 %v300_v51  ;;  %v501_v13 = vld [vmem:[#allocation3 + $0x718] sm:$0xff]  ;;  %v498_v14 = vld [vmem:[#allocation3 + $0x700] sm:$0xff]  ;;  %v500_v15 = vld [vmem:[#allocation3 + $0x710] sm:$0xff] }
  0x36   : > { %556 = vmatprep.subr.mxu0 %v291_v52  ;;  %627 = vmatprep.subr.mxu1 %v293_v53  ;;  %v491_v16 = vld [vmem:[#allocation3 + $0x6c8] sm:$0xff]  ;;  %v493_v17 = vld [vmem:[#allocation3 + $0x6d8] sm:$0xff]  ;;  %v490_v18 = vld [vmem:[#allocation3 + $0x6c0] sm:$0xff] }
  0x37   : > { %557 = vmatpush1.msra.mxu0 %v290_v54  ;;  %628 = vmatpush1.msra.mxu1 %v292_v55  ;;  %v492_v19 = vld [vmem:[#allocation3 + $0x6d0] sm:$0xff]  ;;  %v483_v20 = vld [vmem:[#allocation3 + $0x688] sm:$0xff]  ;;  %v485_v21 = vld [vmem:[#allocation3 + $0x698] sm:$0xff] }
  0x38   : > { %558 = vmatprep.subr.mxu0 %v283_v56  ;;  %629 = vmatprep.subr.mxu1 %v285_v57  ;;  %v482_v22 = vld [vmem:[#allocation3 + $0x680] sm:$0xff]  ;;  %v484_v23 = vld [vmem:[#allocation3 + $0x690] sm:$0xff]  ;;  %v475_v24 = vld [vmem:[#allocation3 + $0x648] sm:$0xff] }
  0x39   : > { %559 = vmatpush1.msra.mxu0 %v282_v58  ;;  %630 = vmatpush1.msra.mxu1 %v284_v59  ;;  %v477_v25 = vld [vmem:[#allocation3 + $0x658] sm:$0xff]  ;;  %v260_v26 = vld [vmem:[%s249_s6] sm:$0xff]  ;;  %v474_v28 = vld [vmem:[#allocation3 + $0x640] sm:$0xff] }
  0x3a   : > { %560 = vmatprep.subr.mxu0 %v275_v60  ;;  %631 = vmatprep.subr.mxu1 %v277_v61  ;;  %v266_v27 = vld [vmem:[%s254_s9] sm:$0xff]  ;;  %v262_v30 = vcombine.high %v260_v26, %v260_v26  ;;  %264 = vst [vmem:[#allocation2] sm:$0xf] %v260_v26  ;;  %v467_v32 = vld [vmem:[#allocation3 + $0x608] sm:$0xff]  ;;  %v469_v33 = vld [vmem:[#allocation3 + $0x618] sm:$0xff] }
  0x3b   : > { %561 = vmatpush1.msra.mxu0 %v274_v62  ;;  %632 = vmatpush1.msra.mxu1 %v276_v63  ;;  %v476_v29 = vld [vmem:[#allocation3 + $0x650] sm:$0xff]  ;;  %271 = vst [vmem:[#allocation2 + $0x8] sm:$0xf0] %v266_v27  ;;  %v268_v31 = vcombine.low %v266_v27, %v266_v27  ;;  %v466_v34 = vld [vmem:[#allocation3 + $0x600] sm:$0xff]  ;;  %v459_v36 = vld [vmem:[#allocation3 + $0x5c8] sm:$0xff] }
  0x3c   : > { %562 = vmatprep.subr.mxu0 %v523_v0  ;;  %633 = vmatprep.subr.mxu1 %v525_v1  ;;  %v468_v35 = vld [vmem:[#allocation3 + $0x610] sm:$0xff]  ;;  %265 = vst [vmem:[#allocation2 + $0x8] sm:$0xf] %v262_v30  ;;  %v461_v37 = vld [vmem:[#allocation3 + $0x5d8] sm:$0xff]  ;;  %v458_v38 = vld [vmem:[#allocation3 + $0x5c0] sm:$0xff] }
  0x3d   : > { %563 = vmatpush2.msra.mxu0 %v522_v2  ;;  %634 = vmatpush2.msra.mxu1 %v524_v3  ;;  %270 = vst [vmem:[#allocation2] sm:$0xf0] %v268_v31  ;;  %v460_v39 = vld [vmem:[#allocation3 + $0x5d0] sm:$0xff]  ;;  %v451_v40 = vld [vmem:[#allocation3 + $0x588] sm:$0xff]  ;;  %v453_v41 = vld [vmem:[#allocation3 + $0x598] sm:$0xff] }
  0x3e   : > { %564 = vmatprep.subr.mxu0 %v515_v4  ;;  %635 = vmatprep.subr.mxu1 %v517_v5  ;;  %v450_v42 = vld [vmem:[#allocation3 + $0x580] sm:$0xff]  ;;  %v452_v43 = vld [vmem:[#allocation3 + $0x590] sm:$0xff]  ;;  %v443_v44 = vld [vmem:[#allocation3 + $0x548] sm:$0xff] }
  0x3f   : > { %565 = vmatpush2.msra.mxu0 %v514_v6  ;;  %636 = vmatpush2.msra.mxu1 %v516_v7  ;;  %v445_v45 = vld [vmem:[#allocation3 + $0x558] sm:$0xff]  ;;  %v442_v46 = vld [vmem:[#allocation3 + $0x540] sm:$0xff]  ;;  %v444_v47 = vld [vmem:[#allocation3 + $0x550] sm:$0xff] }
  0x40   : > { %566 = vmatprep.subr.mxu0 %v507_v8  ;;  %637 = vmatprep.subr.mxu1 %v509_v9  ;;  %v435_v48 = vld [vmem:[#allocation3 + $0x508] sm:$0xff]  ;;  %v437_v49 = vld [vmem:[#allocation3 + $0x518] sm:$0xff]  ;;  %v434_v50 = vld [vmem:[#allocation3 + $0x500] sm:$0xff] }
  0x41   : > { %567 = vmatpush2.msra.mxu0 %v506_v10  ;;  %638 = vmatpush2.msra.mxu1 %v508_v11  ;;  %v436_v51 = vld [vmem:[#allocation3 + $0x510] sm:$0xff]  ;;  %v427_v52 = vld [vmem:[#allocation3 + $0x4c8] sm:$0xff]  ;;  %v429_v53 = vld [vmem:[#allocation3 + $0x4d8] sm:$0xff] }
  0x42   : > { %568 = vmatprep.subr.mxu0 %v499_v12  ;;  %639 = vmatprep.subr.mxu1 %v501_v13  ;;  %v426_v54 = vld [vmem:[#allocation3 + $0x4c0] sm:$0xff]  ;;  %v428_v55 = vld [vmem:[#allocation3 + $0x4d0] sm:$0xff]  ;;  %v419_v56 = vld [vmem:[#allocation3 + $0x488] sm:$0xff] }
  0x43   : > { %569 = vmatpush2.msra.mxu0 %v498_v14  ;;  %640 = vmatpush2.msra.mxu1 %v500_v15  ;;  %v421_v57 = vld [vmem:[#allocation3 + $0x498] sm:$0xff]  ;;  %v418_v58 = vld [vmem:[#allocation3 + $0x480] sm:$0xff]  ;;  %v420_v59 = vld [vmem:[#allocation3 + $0x490] sm:$0xff] }
  0x44   : > { %570 = vmatprep.subr.mxu0 %v491_v16  ;;  %641 = vmatprep.subr.mxu1 %v493_v17  ;;  %v411_v60 = vld [vmem:[#allocation3 + $0x448] sm:$0xff]  ;;  %v413_v61 = vld [vmem:[#allocation3 + $0x458] sm:$0xff]  ;;  %v410_v62 = vld [vmem:[#allocation3 + $0x440] sm:$0xff] }
  0x45   : > { %571 = vmatpush2.msra.mxu0 %v490_v18  ;;  %642 = vmatpush2.msra.mxu1 %v492_v19  ;;  %v412_v63 = vld [vmem:[#allocation3 + $0x450] sm:$0xff]  ;;  %v403_v0 = vld [vmem:[#allocation3 + $0x408] sm:$0xff]  ;;  %v405_v1 = vld [vmem:[#allocation3 + $0x418] sm:$0xff] }
  0x46   : > { %572 = vmatprep.subr.mxu0 %v483_v20  ;;  %643 = vmatprep.subr.mxu1 %v485_v21  ;;  %v402_v2 = vld [vmem:[#allocation3 + $0x400] sm:$0xff]  ;;  %v2593_v3 = vld [vmem:[#allocation2 + $0x8] sm:$0xff]  ;;  %v404_v4 = vld [vmem:[#allocation3 + $0x410] sm:$0xff] }
  0x47   : > { %573 = vmatpush2.msra.mxu0 %v482_v22  ;;  %644 = vmatpush2.msra.mxu1 %v484_v23  ;;  %v2595_v5 = vld [vmem:[#allocation2] sm:$0xff]  ;;  %v399_v6 = vld [vmem:[#allocation3 + $0x3e8] sm:$0xff]  ;;  %v401_v7 = vld [vmem:[#allocation3 + $0x3f8] sm:$0xff] }
  0x48   : > { %574 = vmatprep.subr.mxu0 %v475_v24  ;;  %645 = vmatprep.subr.mxu1 %v477_v25  ;;  %v398_v8 = vld [vmem:[#allocation3 + $0x3e0] sm:$0xff]  ;;  %v400_v9 = vld [vmem:[#allocation3 + $0x3f0] sm:$0xff]  ;;  %v391_v10 = vld [vmem:[#allocation3 + $0x3a8] sm:$0xff] }
  0x49   : > { %575 = vmatpush2.msra.mxu0 %v474_v28  ;;  %646 = vmatpush2.msra.mxu1 %v476_v29  ;;  %v393_v11 = vld [vmem:[#allocation3 + $0x3b8] sm:$0xff]  ;;  %v390_v12 = vld [vmem:[#allocation3 + $0x3a0] sm:$0xff]  ;;  %v392_v13 = vld [vmem:[#allocation3 + $0x3b0] sm:$0xff] }
  0x4a   : > { %576 = vmatprep.subr.mxu0 %v467_v32  ;;  %647 = vmatprep.subr.mxu1 %v469_v33  ;;  %v383_v14 = vld [vmem:[#allocation3 + $0x368] sm:$0xff]  ;;  %v385_v15 = vld [vmem:[#allocation3 + $0x378] sm:$0xff]  ;;  %v382_v16 = vld [vmem:[#allocation3 + $0x360] sm:$0xff] }
  0x4b   : > { %577 = vmatpush2.msra.mxu0 %v466_v34  ;;  %648 = vmatpush2.msra.mxu1 %v468_v35  ;;  %v384_v17 = vld [vmem:[#allocation3 + $0x370] sm:$0xff]  ;;  %v375_v18 = vld [vmem:[#allocation3 + $0x328] sm:$0xff]  ;;  %v377_v19 = vld [vmem:[#allocation3 + $0x338] sm:$0xff] }
  0x4c   : > { %578 = vmatprep.subr.mxu0 %v459_v36  ;;  %649 = vmatprep.subr.mxu1 %v461_v37  ;;  %v374_v20 = vld [vmem:[#allocation3 + $0x320] sm:$0xff]  ;;  %v376_v21 = vld [vmem:[#allocation3 + $0x330] sm:$0xff]  ;;  %v367_v22 = vld [vmem:[#allocation3 + $0x2e8] sm:$0xff] }
  0x4d   : > { %579 = vmatpush2.msra.mxu0 %v458_v38  ;;  %650 = vmatpush2.msra.mxu1 %v460_v39  ;;  %v369_v23 = vld [vmem:[#allocation3 + $0x2f8] sm:$0xff]  ;;  %v366_v24 = vld [vmem:[#allocation3 + $0x2e0] sm:$0xff]  ;;  %v368_v25 = vld [vmem:[#allocation3 + $0x2f0] sm:$0xff] }
  0x4e   : > { %580 = vmatprep.subr.mxu0 %v451_v40  ;;  %651 = vmatprep.subr.mxu1 %v453_v41  ;;  %v359_v26 = vld [vmem:[#allocation3 + $0x2a8] sm:$0xff]  ;;  %v361_v27 = vld [vmem:[#allocation3 + $0x2b8] sm:$0xff]  ;;  %v358_v28 = vld [vmem:[#allocation3 + $0x2a0] sm:$0xff] }
  0x4f   : > { %581 = vmatpush2.msra.mxu0 %v450_v42  ;;  %652 = vmatpush2.msra.mxu1 %v452_v43  ;;  %v360_v29 = vld [vmem:[#allocation3 + $0x2b0] sm:$0xff]  ;;  %v351_v30 = vld [vmem:[#allocation3 + $0x268] sm:$0xff]  ;;  %v353_v31 = vld [vmem:[#allocation3 + $0x278] sm:$0xff] }
  0x50   : > { %582 = vmatprep.subr.mxu0 %v443_v44  ;;  %653 = vmatprep.subr.mxu1 %v445_v45  ;;  %v350_v32 = vld [vmem:[#allocation3 + $0x260] sm:$0xff]  ;;  %v352_v33 = vld [vmem:[#allocation3 + $0x270] sm:$0xff]  ;;  %v343_v34 = vld [vmem:[#allocation3 + $0x228] sm:$0xff] }
  0x51   : > { %583 = vmatpush2.msra.mxu0 %v442_v46  ;;  %654 = vmatpush2.msra.mxu1 %v444_v47  ;;  %v345_v35 = vld [vmem:[#allocation3 + $0x238] sm:$0xff]  ;;  %v342_v36 = vld [vmem:[#allocation3 + $0x220] sm:$0xff]  ;;  %v344_v37 = vld [vmem:[#allocation3 + $0x230] sm:$0xff] }
  0x52   : > { %584 = vmatprep.subr.mxu0 %v435_v48  ;;  %655 = vmatprep.subr.mxu1 %v437_v49  ;;  %v335_v38 = vld [vmem:[#allocation3 + $0x1e8] sm:$0xff]  ;;  %v337_v39 = vld [vmem:[#allocation3 + $0x1f8] sm:$0xff]  ;;  %v334_v40 = vld [vmem:[#allocation3 + $0x1e0] sm:$0xff] }
  0x53   : > { %585 = vmatpush2.msra.mxu0 %v434_v50  ;;  %656 = vmatpush2.msra.mxu1 %v436_v51  ;;  %v336_v41 = vld [vmem:[#allocation3 + $0x1f0] sm:$0xff]  ;;  %v327_v42 = vld [vmem:[#allocation3 + $0x1a8] sm:$0xff]  ;;  %v329_v43 = vld [vmem:[#allocation3 + $0x1b8] sm:$0xff] }
  0x54   : > { %586 = vmatprep.subr.mxu0 %v427_v52  ;;  %657 = vmatprep.subr.mxu1 %v429_v53  ;;  %v326_v44 = vld [vmem:[#allocation3 + $0x1a0] sm:$0xff]  ;;  %v328_v45 = vld [vmem:[#allocation3 + $0x1b0] sm:$0xff]  ;;  %v319_v46 = vld [vmem:[#allocation3 + $0x168] sm:$0xff] }
  0x55   : > { %587 = vmatpush2.msra.mxu0 %v426_v54  ;;  %658 = vmatpush2.msra.mxu1 %v428_v55  ;;  %v321_v47 = vld [vmem:[#allocation3 + $0x178] sm:$0xff]  ;;  %v318_v48 = vld [vmem:[#allocation3 + $0x160] sm:$0xff]  ;;  %v320_v49 = vld [vmem:[#allocation3 + $0x170] sm:$0xff] }
  0x56   : > { %588 = vmatprep.subr.mxu0 %v419_v56  ;;  %659 = vmatprep.subr.mxu1 %v421_v57  ;;  %v311_v50 = vld [vmem:[#allocation3 + $0x128] sm:$0xff]  ;;  %v313_v51 = vld [vmem:[#allocation3 + $0x138] sm:$0xff]  ;;  %v310_v52 = vld [vmem:[#allocation3 + $0x120] sm:$0xff] }
  0x57   : > { %589 = vmatpush2.msra.mxu0 %v418_v58  ;;  %660 = vmatpush2.msra.mxu1 %v420_v59  ;;  %v312_v53 = vld [vmem:[#allocation3 + $0x130] sm:$0xff]  ;;  %v303_v54 = vld [vmem:[#allocation3 + $0xe8] sm:$0xff]  ;;  %v305_v55 = vld [vmem:[#allocation3 + $0xf8] sm:$0xff] }
  0x58   : > { %590 = vmatprep.subr.mxu0 %v411_v60  ;;  %661 = vmatprep.subr.mxu1 %v413_v61  ;;  %v302_v56 = vld [vmem:[#allocation3 + $0xe0] sm:$0xff]  ;;  %v304_v57 = vld [vmem:[#allocation3 + $0xf0] sm:$0xff]  ;;  %v295_v58 = vld [vmem:[#allocation3 + $0xa8] sm:$0xff] }
  0x59   : > { %591 = vmatpush2.msra.mxu0 %v410_v62  ;;  %662 = vmatpush2.msra.mxu1 %v412_v63  ;;  %v297_v59 = vld [vmem:[#allocation3 + $0xb8] sm:$0xff]  ;;  %v294_v60 = vld [vmem:[#allocation3 + $0xa0] sm:$0xff]  ;;  %v296_v61 = vld [vmem:[#allocation3 + $0xb0] sm:$0xff] }
  0x5a   : > { %592 = vmatprep.subr.mxu0 %v403_v0  ;;  %663 = vmatprep.subr.mxu1 %v405_v1  ;;  %v287_v62 = vld [vmem:[#allocation3 + $0x68] sm:$0xff]  ;;  %v289_v63 = vld [vmem:[#allocation3 + $0x78] sm:$0xff]  ;;  %v286_v0 = vld [vmem:[#allocation3 + $0x60] sm:$0xff] }
  0x5b   : > { %593 = vmatpush2.msra.mxu0 %v402_v2  ;;  %594 = vmatprep.mubr.f32.mxu0 %v2593_v3  ;;  %v288_v1 = vld [vmem:[#allocation3 + $0x70] sm:$0xff]  ;;  %v279_v2 = vld [vmem:[#allocation3 + $0x28] sm:$0xff] }
  0x5c   : > { %664 = vmatpush2.msra.mxu1 %v404_v4  ;;  %665 = vmatprep.mubr.f32.mxu1 %v2593_v3  ;;  %v281_v4 = vld [vmem:[#allocation3 + $0x38] sm:$0xff] }
  0x5d   : > { %595 = vmatmul.mubr.f32.vlgmr.msra.gmra.mxu0 %v2595_v5  ;;  %666 = vmatmul.mubr.f32.vlgmr.msra.gmra.mxu1 %v2595_v5 }
  0x5e   : > { %672 = vmatprep.subr.mxu0 %v399_v6  ;;  %743 = vmatprep.subr.mxu1 %v401_v7  ;;  %v278_v6 = vld [vmem:[#allocation3 + $0x20] sm:$0xff]  ;;  %v280_v7 = vld [vmem:[#allocation3 + $0x30] sm:$0xff] }
  0x5f   : > { %673 = vmatpush1.msra.mxu0 %v398_v8  ;;  %744 = vmatpush1.msra.mxu1 %v400_v9  ;;  %v527_v8 = vld [vmem:[#allocation3 + $0x7e8] sm:$0xff]  ;;  %v529_v9 = vld [vmem:[#allocation3 + $0x7f8] sm:$0xff] }
  0x60   : > { %674 = vmatprep.subr.mxu0 %v391_v10  ;;  %745 = vmatprep.subr.mxu1 %v393_v11  ;;  %v526_v10 = vld [vmem:[#allocation3 + $0x7e0] sm:$0xff]  ;;  %v528_v11 = vld [vmem:[#allocation3 + $0x7f0] sm:$0xff] }
  0x61   : > { %675 = vmatpush1.msra.mxu0 %v390_v12  ;;  %746 = vmatpush1.msra.mxu1 %v392_v13  ;;  %v519_v12 = vld [vmem:[#allocation3 + $0x7a8] sm:$0xff]  ;;  %v521_v13 = vld [vmem:[#allocation3 + $0x7b8] sm:$0xff] }
  0x62   : > { %676 = vmatprep.subr.mxu0 %v383_v14  ;;  %747 = vmatprep.subr.mxu1 %v385_v15  ;;  %v518_v14 = vld [vmem:[#allocation3 + $0x7a0] sm:$0xff]  ;;  %v520_v15 = vld [vmem:[#allocation3 + $0x7b0] sm:$0xff] }
  0x63   : > { %677 = vmatpush1.msra.mxu0 %v382_v16  ;;  %748 = vmatpush1.msra.mxu1 %v384_v17  ;;  %v511_v16 = vld [vmem:[#allocation3 + $0x768] sm:$0xff]  ;;  %v513_v17 = vld [vmem:[#allocation3 + $0x778] sm:$0xff] }
  0x64   : > { %678 = vmatprep.subr.mxu0 %v375_v18  ;;  %749 = vmatprep.subr.mxu1 %v377_v19  ;;  %v510_v18 = vld [vmem:[#allocation3 + $0x760] sm:$0xff]  ;;  %v512_v19 = vld [vmem:[#allocation3 + $0x770] sm:$0xff] }
  0x65   : > { %679 = vmatpush1.msra.mxu0 %v374_v20  ;;  %750 = vmatpush1.msra.mxu1 %v376_v21  ;;  %v503_v20 = vld [vmem:[#allocation3 + $0x728] sm:$0xff]  ;;  %v505_v21 = vld [vmem:[#allocation3 + $0x738] sm:$0xff] }
  0x66   : > { %680 = vmatprep.subr.mxu0 %v367_v22  ;;  %751 = vmatprep.subr.mxu1 %v369_v23  ;;  %v502_v22 = vld [vmem:[#allocation3 + $0x720] sm:$0xff]  ;;  %v504_v23 = vld [vmem:[#allocation3 + $0x730] sm:$0xff] }
  0x67   : > { %681 = vmatpush1.msra.mxu0 %v366_v24  ;;  %752 = vmatpush1.msra.mxu1 %v368_v25  ;;  %v495_v24 = vld [vmem:[#allocation3 + $0x6e8] sm:$0xff]  ;;  %v497_v25 = vld [vmem:[#allocation3 + $0x6f8] sm:$0xff] }
  0x68   : > { %682 = vmatprep.subr.mxu0 %v359_v26  ;;  %753 = vmatprep.subr.mxu1 %v361_v27  ;;  %v494_v26 = vld [vmem:[#allocation3 + $0x6e0] sm:$0xff]  ;;  %v496_v27 = vld [vmem:[#allocation3 + $0x6f0] sm:$0xff] }
  0x69   : > { %683 = vmatpush1.msra.mxu0 %v358_v28  ;;  %754 = vmatpush1.msra.mxu1 %v360_v29  ;;  %v487_v28 = vld [vmem:[#allocation3 + $0x6a8] sm:$0xff]  ;;  %v489_v29 = vld [vmem:[#allocation3 + $0x6b8] sm:$0xff] }
  0x6a   : > { %684 = vmatprep.subr.mxu0 %v351_v30  ;;  %755 = vmatprep.subr.mxu1 %v353_v31  ;;  %v486_v30 = vld [vmem:[#allocation3 + $0x6a0] sm:$0xff]  ;;  %v488_v31 = vld [vmem:[#allocation3 + $0x6b0] sm:$0xff] }
  0x6b   : > { %685 = vmatpush1.msra.mxu0 %v350_v32  ;;  %756 = vmatpush1.msra.mxu1 %v352_v33  ;;  %v479_v32 = vld [vmem:[#allocation3 + $0x668] sm:$0xff]  ;;  %v481_v33 = vld [vmem:[#allocation3 + $0x678] sm:$0xff] }
  0x6c   : > { %686 = vmatprep.subr.mxu0 %v343_v34  ;;  %757 = vmatprep.subr.mxu1 %v345_v35  ;;  %v478_v34 = vld [vmem:[#allocation3 + $0x660] sm:$0xff]  ;;  %v480_v35 = vld [vmem:[#allocation3 + $0x670] sm:$0xff] }
  0x6d   : > { %687 = vmatpush1.msra.mxu0 %v342_v36  ;;  %758 = vmatpush1.msra.mxu1 %v344_v37  ;;  %v471_v36 = vld [vmem:[#allocation3 + $0x628] sm:$0xff]  ;;  %v473_v37 = vld [vmem:[#allocation3 + $0x638] sm:$0xff] }
  0x6e   : > { %688 = vmatprep.subr.mxu0 %v335_v38  ;;  %759 = vmatprep.subr.mxu1 %v337_v39  ;;  %v470_v38 = vld [vmem:[#allocation3 + $0x620] sm:$0xff]  ;;  %v472_v39 = vld [vmem:[#allocation3 + $0x630] sm:$0xff] }
  0x6f   : > { %689 = vmatpush1.msra.mxu0 %v334_v40  ;;  %760 = vmatpush1.msra.mxu1 %v336_v41  ;;  %v463_v40 = vld [vmem:[#allocation3 + $0x5e8] sm:$0xff]  ;;  %v465_v41 = vld [vmem:[#allocation3 + $0x5f8] sm:$0xff] }
  0x70   : > { %690 = vmatprep.subr.mxu0 %v327_v42  ;;  %761 = vmatprep.subr.mxu1 %v329_v43  ;;  %v462_v42 = vld [vmem:[#allocation3 + $0x5e0] sm:$0xff]  ;;  %v464_v43 = vld [vmem:[#allocation3 + $0x5f0] sm:$0xff] }
  0x71   : > { %691 = vmatpush1.msra.mxu0 %v326_v44  ;;  %762 = vmatpush1.msra.mxu1 %v328_v45  ;;  %v455_v44 = vld [vmem:[#allocation3 + $0x5a8] sm:$0xff]  ;;  %v457_v45 = vld [vmem:[#allocation3 + $0x5b8] sm:$0xff] }
  0x72   : > { %692 = vmatprep.subr.mxu0 %v319_v46  ;;  %763 = vmatprep.subr.mxu1 %v321_v47  ;;  %v454_v46 = vld [vmem:[#allocation3 + $0x5a0] sm:$0xff]  ;;  %v456_v47 = vld [vmem:[#allocation3 + $0x5b0] sm:$0xff] }
  0x73   : > { %693 = vmatpush1.msra.mxu0 %v318_v48  ;;  %764 = vmatpush1.msra.mxu1 %v320_v49  ;;  %v447_v48 = vld [vmem:[#allocation3 + $0x568] sm:$0xff]  ;;  %v449_v49 = vld [vmem:[#allocation3 + $0x578] sm:$0xff] }
  0x74   : > { %694 = vmatprep.subr.mxu0 %v311_v50  ;;  %765 = vmatprep.subr.mxu1 %v313_v51  ;;  %v446_v50 = vld [vmem:[#allocation3 + $0x560] sm:$0xff]  ;;  %v448_v51 = vld [vmem:[#allocation3 + $0x570] sm:$0xff] }
  0x75   : > { %695 = vmatpush1.msra.mxu0 %v310_v52  ;;  %766 = vmatpush1.msra.mxu1 %v312_v53  ;;  %v439_v52 = vld [vmem:[#allocation3 + $0x528] sm:$0xff]  ;;  %v441_v53 = vld [vmem:[#allocation3 + $0x538] sm:$0xff] }
  0x76   : > { %696 = vmatprep.subr.mxu0 %v303_v54  ;;  %767 = vmatprep.subr.mxu1 %v305_v55  ;;  %v438_v54 = vld [vmem:[#allocation3 + $0x520] sm:$0xff]  ;;  %v440_v55 = vld [vmem:[#allocation3 + $0x530] sm:$0xff] }
  0x77   : > { %697 = vmatpush1.msra.mxu0 %v302_v56  ;;  %768 = vmatpush1.msra.mxu1 %v304_v57  ;;  %v431_v56 = vld [vmem:[#allocation3 + $0x4e8] sm:$0xff]  ;;  %v433_v57 = vld [vmem:[#allocation3 + $0x4f8] sm:$0xff] }
  0x78   : > { %698 = vmatprep.subr.mxu0 %v295_v58  ;;  %769 = vmatprep.subr.mxu1 %v297_v59  ;;  %v430_v58 = vld [vmem:[#allocation3 + $0x4e0] sm:$0xff]  ;;  %v432_v59 = vld [vmem:[#allocation3 + $0x4f0] sm:$0xff] }
  0x79   : > { %699 = vmatpush1.msra.mxu0 %v294_v60  ;;  %770 = vmatpush1.msra.mxu1 %v296_v61  ;;  %v423_v60 = vld [vmem:[#allocation3 + $0x4a8] sm:$0xff]  ;;  %v425_v61 = vld [vmem:[#allocation3 + $0x4b8] sm:$0xff] }
  0x7a   : > { %700 = vmatprep.subr.mxu0 %v287_v62  ;;  %771 = vmatprep.subr.mxu1 %v289_v63  ;;  %v422_v62 = vld [vmem:[#allocation3 + $0x4a0] sm:$0xff]  ;;  %v415_v63 = vld [vmem:[#allocation3 + $0x468] sm:$0xff] }
  0x7b   : > { %701 = vmatpush1.msra.mxu0 %v286_v0  ;;  %772 = vmatpush1.msra.mxu1 %v288_v1  ;;  %v424_v0 = vld [vmem:[#allocation3 + $0x4b0] sm:$0xff]  ;;  %v414_v1 = vld [vmem:[#allocation3 + $0x460] sm:$0xff] }
  0x7c   : > { %702 = vmatprep.subr.mxu0 %v279_v2  ;;  %773 = vmatprep.subr.mxu1 %v281_v4  ;;  %v417_v2 = vld [vmem:[#allocation3 + $0x478] sm:$0xff]  ;;  %v407_v4 = vld [vmem:[#allocation3 + $0x428] sm:$0xff] }
  0x7d   : > { %703 = vmatpush1.msra.mxu0 %v278_v6  ;;  %774 = vmatpush1.msra.mxu1 %v280_v7  ;;  %v416_v6 = vld [vmem:[#allocation3 + $0x470] sm:$0xff]  ;;  %v406_v7 = vld [vmem:[#allocation3 + $0x420] sm:$0xff] }
  0x7e   : > { %704 = vmatprep.subr.mxu0 %v527_v8  ;;  %775 = vmatprep.subr.mxu1 %v529_v9  ;;  %v409_v8 = vld [vmem:[#allocation3 + $0x438] sm:$0xff]  ;;  %v408_v9 = vld [vmem:[#allocation3 + $0x430] sm:$0xff] }
  0x7f   : > { %705 = vmatpush2.msra.mxu0 %v526_v10  ;;  %776 = vmatpush2.msra.mxu1 %v528_v11  ;;  %v2512_v10 = vmov 0.0  }
  0x80   : > { %706 = vmatprep.subr.mxu0 %v519_v12  ;;  %777 = vmatprep.subr.mxu1 %v521_v13  ;;  %v2521_v12 = vmov 1.0  }
  0x81   : > { %707 = vmatpush2.msra.mxu0 %v518_v14  ;;  %778 = vmatpush2.msra.mxu1 %v520_v15 }
  0x82   : > { %708 = vmatprep.subr.mxu0 %v511_v16  ;;  %779 = vmatprep.subr.mxu1 %v513_v17 }
  0x83   : > { %709 = vmatpush2.msra.mxu0 %v510_v18  ;;  %780 = vmatpush2.msra.mxu1 %v512_v19 }
  0x84   : > { %710 = vmatprep.subr.mxu0 %v503_v20  ;;  %781 = vmatprep.subr.mxu1 %v505_v21 }
  0x85   : > { %711 = vmatpush2.msra.mxu0 %v502_v22  ;;  %782 = vmatpush2.msra.mxu1 %v504_v23 }
  0x86   : > { %712 = vmatprep.subr.mxu0 %v495_v24  ;;  %783 = vmatprep.subr.mxu1 %v497_v25 }
  0x87   : > { %713 = vmatpush2.msra.mxu0 %v494_v26  ;;  %784 = vmatpush2.msra.mxu1 %v496_v27 }
  0x88   : > { %714 = vmatprep.subr.mxu0 %v487_v28  ;;  %785 = vmatprep.subr.mxu1 %v489_v29 }
  0x89   : > { %715 = vmatpush2.msra.mxu0 %v486_v30  ;;  %786 = vmatpush2.msra.mxu1 %v488_v31 }
  0x8a   : > { %716 = vmatprep.subr.mxu0 %v479_v32  ;;  %787 = vmatprep.subr.mxu1 %v481_v33 }
  0x8b   : > { %717 = vmatpush2.msra.mxu0 %v478_v34  ;;  %788 = vmatpush2.msra.mxu1 %v480_v35 }
  0x8c   : > { %718 = vmatprep.subr.mxu0 %v471_v36  ;;  %789 = vmatprep.subr.mxu1 %v473_v37  ;;  %v814_v37 = vlaneseq }
  0x8d   : > { %719 = vmatpush2.msra.mxu0 %v470_v38  ;;  %790 = vmatpush2.msra.mxu1 %v472_v39 }
  0x8e   : > { %720 = vmatprep.subr.mxu0 %v463_v40  ;;  %791 = vmatprep.subr.mxu1 %v465_v41  ;;  %v2803_v40 = vand.u32 127, %v814_v37 }
  0x8f   : > { %721 = vmatpush2.msra.mxu0 %v462_v42  ;;  %792 = vmatpush2.msra.mxu1 %v464_v43 }
  0x90   : > { %722 = vmatprep.subr.mxu0 %v455_v44  ;;  %793 = vmatprep.subr.mxu1 %v457_v45  ;;  %v816_v43 = vadd.s32 128, %v2803_v40 }
  0x91   : > { %723 = vmatpush2.msra.mxu0 %v454_v46  ;;  %794 = vmatpush2.msra.mxu1 %v456_v47 }
  0x92   : > { %724 = vmatprep.subr.mxu0 %v447_v48  ;;  %795 = vmatprep.subr.mxu1 %v449_v49  ;;  %v834_v46 = vand.u32 31, %v816_v43  ;;  %v827_v48 = vand.u32 31, %v2803_v40 }
  0x93   : > { %725 = vmatpush2.msra.mxu0 %v446_v50  ;;  %796 = vmatpush2.msra.mxu1 %v448_v51 }
  0x94   : > { %726 = vmatprep.subr.mxu0 %v439_v52  ;;  %797 = vmatprep.subr.mxu1 %v441_v53  ;;  %vm2817_vm2 = vcmp.ne.s32.totalorder %v834_v46, 31  ;;  %vm2821_vm3 = vcmp.ne.s32.totalorder %v827_v48, 31  ;;  %vm2836_vm6 = vcmp.ne.s32.totalorder %v834_v46, 0  ;;  %vm2841_vm8 = vcmp.ne.s32.totalorder %v827_v48, 0 }
  0x95   : > { %727 = vmatpush2.msra.mxu0 %v438_v54  ;;  %798 = vmatpush2.msra.mxu1 %v440_v55 }
  0x96   : > { %728 = vmatprep.subr.mxu0 %v431_v56  ;;  %799 = vmatprep.subr.mxu1 %v433_v57 }
  0x97   : > { %729 = vmatpush2.msra.mxu0 %v430_v58  ;;  %800 = vmatpush2.msra.mxu1 %v432_v59 }
  0x98   : > { %730 = vmatprep.subr.mxu0 %v423_v60  ;;  %801 = vmatprep.subr.mxu1 %v425_v61 }
  0x99   : > { %731 = vmatpush2.msra.mxu0 %v422_v62  ;;  %736 = vmatprep.mubr.f32.mxu0 %v2593_v3 }
  0x9a   : > { %732 = vmatprep.subr.mxu0 %v415_v63  ;;  %802 = vmatpush2.msra.mxu1 %v424_v0 }
  0x9b   : > { %733 = vmatpush2.msra.mxu0 %v414_v1  ;;  %803 = vmatprep.subr.mxu1 %v417_v2 }
  0x9c   : > { %734 = vmatprep.subr.mxu0 %v407_v4  ;;  %804 = vmatpush2.msra.mxu1 %v416_v6 }
  0x9d   : > { %735 = vmatpush2.msra.mxu0 %v406_v7  ;;  %805 = vmatprep.subr.mxu1 %v409_v8 }
  0x9e   : > { %737 = vmatmul.mubr.f32.vlgmr.msra.gmra.mxu0 %v2595_v5  ;;  %806 = vmatpush2.msra.mxu1 %v408_v9 }
  0x9f   : > { %807 = vmatprep.mubr.f32.mxu1 %v2593_v3  ;;  %1020 = vrot.lane.b32.xlu1 %v2512_v10, %s2513_s10 }
  0xa0   : > { %808 = vmatmul.mubr.f32.vlgmr.msra.gmra.mxu1 %v2595_v5  ;;  %1063 = vrot.lane.b32.xlu0 %v2512_v10, %s2514_s11 }
  0xa1   : > { %1377 = vmatprep.mubr.f32.mxu0 %v2512_v10  ;;  %1448 = vmatprep.mubr.f32.mxu1 %v2512_v10 }
  0xa2   : > { %2313 = vmatprep.subr.msk.mxu0 %vm3602_vm0, %v2521_v12  ;;  %2328 = vmatprep.subr.msk.mxu1 %vm3602_vm0, %v2521_v12 }
  0xa3   : > { %961 = vrot.lane.b32.xlu1 %v2512_v10, %s2515_s12  ;;  %2314 = vmatpush1.msk.msra.mxu0 %vm3602_vm0, %v2521_v12 }
  0xa4   : > { %1235 = vrot.lane.b32.xlu0 %v2512_v10, %s2516_s13  ;;  %2329 = vmatpush1.msk.msra.mxu1 %vm3602_vm0, %v2521_v12 }
  0xa7   : > { %1208 = vrot.lane.b32.xlu1 %v2512_v10, %s2517_s14 }
  0xab   : > { %1286 = vrot.lane.b32.xlu1 %v2512_v10, %s2518_s15 }
  0xaf   : > { %1165 = vrot.lane.b32.xlu1 %v2512_v10, %s2519_s16 }
 0x111   : > { %v2723_v16 = vpop.permute.xlu1 %1020 }
 0x112   : > { %v2751_v21 = vpop.permute.xlu0 %1063 }
 0x115   : > { %v2733_v18 = vpop.permute.xlu1 %961 }
 0x116   : > { %v2763_v24 = vpop.permute.xlu0 %1235 }
 0x119   : > { %v2741_v19 = vpop.permute.xlu1 %1208 }
 0x11d   : > { %v2621_v3 = vpop.f32.mrf.mxu0  ;;  %v2623_v5 = vpop.f32.mrf.mxu1 }
 0x11e   : > { %1196 = vrot.lane.b32.xlu0 %v2623_v5, %s2517_s14  ;;  %1192 = vrot.lane.b32.xlu1 %v2621_v3, %s2517_s14  ;;  %v2749_v20 = vpop.permute.xlu1 %1286 }
 0x11f   : > { %v2649_v11 = vpop.f32.mrf.mxu0  ;;  %v2675_v13 = vpop.f32.mrf.mxu1 }
 0x122   : > { %1274 = vrot.lane.b32.xlu0 %v2623_v5, %s2518_s15  ;;  %1270 = vrot.lane.b32.xlu1 %v2621_v3, %s2518_s15  ;;  %v2761_v23 = vpop.permute.xlu1 %1165 }
 0x126   : > { %1149 = vrot.lane.b32.xlu0 %v2621_v3, %s2519_s16  ;;  %1153 = vrot.lane.b32.xlu1 %v2623_v5, %s2519_s16 }
 0x12a   : > { %1110 = vrot.lane.b32.xlu0 %v2623_v5, %s2520_s17  ;;  %1106 = vrot.lane.b32.xlu1 %v2621_v3, %s2520_s17 }
 0x12e   : > { %1065 = vrot.lane.b32.xlu0 %v2621_v3, %s2514_s11  ;;  %1022 = vrot.lane.b32.xlu1 %v2621_v3, %s2513_s10 }
 0x132   : > { %1237 = vrot.lane.b32.xlu0 %v2621_v3, %s2516_s13  ;;  %963 = vrot.lane.b32.xlu1 %v2621_v3, %s2515_s12 }
 0x136   : > { %1069 = vrot.lane.b32.xlu0 %v2623_v5, %s2514_s11  ;;  %1272 = vrot.lane.b32.xlu1 %v2649_v11, %s2518_s15 }
 0x13a   : > { %1026 = vrot.lane.b32.xlu0 %v2623_v5, %s2513_s10  ;;  %1108 = vrot.lane.b32.xlu1 %v2649_v11, %s2520_s17 }
 0x13e   : > { %1241 = vrot.lane.b32.xlu0 %v2623_v5, %s2516_s13  ;;  %1067 = vrot.lane.b32.xlu1 %v2649_v11, %s2514_s11 }
 0x142   : > { %967 = vrot.lane.b32.xlu0 %v2623_v5, %s2515_s12  ;;  %1239 = vrot.lane.b32.xlu1 %v2649_v11, %s2516_s13 }
 0x146   : > { %1071 = vrot.lane.b32.xlu1 %v2675_v13, %s2514_s11  ;;  %1194 = vrot.lane.b32.xlu0 %v2649_v11, %s2517_s14 }
 0x14a   : > { %1028 = vrot.lane.b32.xlu1 %v2675_v13, %s2513_s10  ;;  %1151 = vrot.lane.b32.xlu0 %v2649_v11, %s2519_s16 }
 0x14e   : > { %1243 = vrot.lane.b32.xlu1 %v2675_v13, %s2516_s13  ;;  %1024 = vrot.lane.b32.xlu0 %v2649_v11, %s2513_s10 }
 0x152   : > { %969 = vrot.lane.b32.xlu1 %v2675_v13, %s2515_s12  ;;  %965 = vrot.lane.b32.xlu0 %v2649_v11, %s2515_s12 }
 0x156   : > { %1198 = vrot.lane.b32.xlu0 %v2675_v13, %s2517_s14 }
 0x15a   : > { %1276 = vrot.lane.b32.xlu0 %v2675_v13, %s2518_s15 }
 0x15e   : > { %v2697_v14 = vpop.f32.mrf.mxu0  ;;  %1155 = vrot.lane.b32.xlu0 %v2675_v13, %s2519_s16 }
 0x15f   : > { %1200 = vrot.lane.b32.xlu1 %v2697_v14, %s2517_s14 }
 0x160   : > { %v2703_v15 = vpop.f32.mrf.mxu1  ;;  %v2727_v17 = vpop.f32.mrf.mxu0 }
 0x162   : > { %1112 = vrot.lane.b32.xlu0 %v2675_v13, %s2520_s17  ;;  %v2757_v22 = vpop.f32.mrf.mxu1 }
 0x163   : > { %1204 = vrot.lane.b32.xlu1 %v2703_v15, %s2517_s14 }
 0x166   : > { %1073 = vrot.lane.b32.xlu0 %v2697_v14, %s2514_s11 }
 0x167   : > { %1278 = vrot.lane.b32.xlu1 %v2697_v14, %s2518_s15 }
 0x16a   : > { %1030 = vrot.lane.b32.xlu0 %v2697_v14, %s2513_s10 }
 0x16b   : > { %1157 = vrot.lane.b32.xlu1 %v2697_v14, %s2519_s16 }
 0x16e   : > { %1245 = vrot.lane.b32.xlu0 %v2697_v14, %s2516_s13 }
 0x16f   : > { %1282 = vrot.lane.b32.xlu1 %v2703_v15, %s2518_s15 }
 0x172   : > { %971 = vrot.lane.b32.xlu0 %v2697_v14, %s2515_s12 }
 0x173   : > { %1114 = vrot.lane.b32.xlu1 %v2697_v14, %s2520_s17 }
 0x176   : > { %1202 = vrot.lane.b32.xlu0 %v2727_v17, %s2517_s14 }
 0x177   : > { %1161 = vrot.lane.b32.xlu1 %v2703_v15, %s2519_s16 }
 0x17a   : > { %1280 = vrot.lane.b32.xlu0 %v2727_v17, %s2518_s15 }
 0x17b   : > { %1118 = vrot.lane.b32.xlu1 %v2703_v15, %s2520_s17 }
 0x17e   : > { %1159 = vrot.lane.b32.xlu0 %v2727_v17, %s2519_s16 }
 0x17f   : > { %1075 = vrot.lane.b32.xlu1 %v2727_v17, %s2514_s11 }
 0x182   : > { %1116 = vrot.lane.b32.xlu0 %v2727_v17, %s2520_s17 }
 0x183   : > { %1032 = vrot.lane.b32.xlu1 %v2727_v17, %s2513_s10 }
 0x186   : > { %1077 = vrot.lane.b32.xlu0 %v2703_v15, %s2514_s11 }
 0x187   : > { %1247 = vrot.lane.b32.xlu1 %v2727_v17, %s2516_s13 }
 0x18a   : > { %1206 = vrot.lane.b32.xlu0 %v2757_v22, %s2517_s14 }
 0x18b   : > { %973 = vrot.lane.b32.xlu1 %v2727_v17, %s2515_s12 }
 0x18e   : > { %1284 = vrot.lane.b32.xlu0 %v2757_v22, %s2518_s15 }
 0x18f   : > { %1122 = vrot.lane.b32.xlu1 %v2512_v10, %s2520_s17 }
 0x190   : > { %v2771_v25 = vpop.permute.xlu0 %1196  ;;  %v1193_v26 = vpop.permute.xlu1 %1192 }
 0x192   : > { %1163 = vrot.lane.b32.xlu0 %v2757_v22, %s2519_s16 }
 0x193   : > { %1079 = vrot.lane.b32.xlu1 %v2757_v22, %s2514_s11 }
 0x194   : > { %v2777_v27 = vpop.permute.xlu0 %1274  ;;  %v1271_v28 = vpop.permute.xlu1 %1270 }
 0x196   : > { %1120 = vrot.lane.b32.xlu0 %v2757_v22, %s2520_s17 }
 0x197   : > { %1036 = vrot.lane.b32.xlu1 %v2757_v22, %s2513_s10 }
 0x198   : > { %v1150_v29 = vpop.permute.xlu0 %1149  ;;  %v2783_v30 = vpop.permute.xlu1 %1153 }
 0x19a   : > { %1034 = vrot.lane.b32.xlu0 %v2703_v15, %s2513_s10 }
 0x19b   : > { %1251 = vrot.lane.b32.xlu1 %v2757_v22, %s2516_s13 }
 0x19c   : > { %v2789_v31 = vpop.permute.xlu0 %1110  ;;  %v1107_v32 = vpop.permute.xlu1 %1106 }
 0x19e   : > { %1249 = vrot.lane.b32.xlu0 %v2703_v15, %s2516_s13 }
 0x19f   : > { %977 = vrot.lane.b32.xlu1 %v2757_v22, %s2515_s12 }
 0x1a0   : > { %v1066_v33 = vpop.permute.xlu0 %1065  ;;  %v1023_v34 = vpop.permute.xlu1 %1022 }
 0x1a1   : > { %v1082_v6 = vsel %vm3609_vm9, %v2751_v21, %v1066_v33  ;;  %v1039_v9 = vsel %vm3608_vm10, %v2723_v16, %v1023_v34 }
 0x1a2   : > { %975 = vrot.lane.b32.xlu0 %v2703_v15, %s2515_s12 }
 0x1a4   : > { %v2797_v35 = vpop.permute.xlu0 %1237  ;;  %v2799_v36 = vpop.permute.xlu1 %963 }
 0x1a5   : > { %v980_v37 = vsel %vm3605_vm12, %v2733_v18, %v2799_v36 }
 0x1a8   : > { %v2801_v38 = vpop.permute.xlu0 %1069  ;;  %v1273_v39 = vpop.permute.xlu1 %1272 }
 0x1a9   : > { %v1290_v56 = vsel %vm3607_vm4, %v1273_v39, %v2777_v27  ;;  %v1289_v59 = vsel %vm3607_vm4, %v1271_v28, %v1273_v39  ;;  %v1254_v28 = vsel %vm3610_vm11, %v2763_v24, %v2797_v35 }
 0x1ac   : > { %v2805_v41 = vpop.permute.xlu0 %1026  ;;  %v1109_v42 = vpop.permute.xlu1 %1108 }
 0x1ad   : > { %v1126_v63 = vsel %vm3611_vm7, %v1109_v42, %v2789_v31  ;;  %v1125_v0 = vsel %vm3611_vm7, %v1107_v32, %v1109_v42 }
 0x1b0   : > { %v2808_v44 = vpop.permute.xlu0 %1241  ;;  %v2810_v45 = vpop.permute.xlu1 %1067 }
 0x1b1   : > { %v1083_v4 = vsel %vm3609_vm9, %v1066_v33, %v2810_v45  ;;  %v2898_v33 = vld [vmem:[%s3599_s3] sm:$0xff] }
 0x1b4   : > { %v2812_v47 = vpop.permute.xlu0 %967  ;;  %v2815_v49 = vpop.permute.xlu1 %1239 }
 0x1b8   : > { %v1195_v51 = vpop.permute.xlu0 %1194  ;;  %v2830_v55 = vpop.permute.xlu1 %1071 }
 0x1b9   : > { %v1211_v53 = vsel %vm3606_vm1, %v1193_v26, %v1195_v51  ;;  %v1212_v54 = vsel %vm3606_vm1, %v1195_v51, %v2771_v25 }
 0x1ba   : > { %2315 = vmatprep.subr.msk.mxu0 %vm2817_vm2, %v1212_v54 }
 0x1bb   : > { %2316 = vmatpush1.msk.msra.mxu0 %vm2821_vm3, %v1211_v53 }
 0x1bc   : > { %1329 = vmatprep.subr.mxu0 %v1290_v56  ;;  %v1152_v58 = vpop.permute.xlu0 %1151  ;;  %v2859_v2 = vpop.permute.xlu1 %1028 }
 0x1bd   : > { %v1168_v61 = vsel %vm3604_vm5, %v1150_v29, %v1152_v58  ;;  %1330 = vmatpush1.msra.mxu0 %v1289_v59  ;;  %v1169_v62 = vsel %vm3604_vm5, %v1152_v58, %v2783_v30  ;;  %v818_v29 = vadd.s32 384, %v2803_v40 }
 0x1be   : > { %2317 = vmatprep.subr.msk.mxu0 %vm2836_vm6, %v1169_v62 }
 0x1bf   : > { %2318 = vmatpush1.msk.msra.mxu0 %vm2841_vm8, %v1168_v61  ;;  %v848_v39 = vand.u32 31, %v818_v29 }
 0x1c0   : > { %2319 = vmatprep.subr.msk.mxu0 %vm2817_vm2, %v1126_v63  ;;  %v2857_v1 = vpop.permute.xlu0 %1024 }
 0x1c1   : > { %2320 = vmatpush1.msk.msra.mxu0 %vm2821_vm3, %v1125_v0  ;;  %v1040_v8 = vsel %vm3608_vm10, %v1023_v34, %v2857_v1  ;;  %v817_v34 = vadd.s32 256, %v2803_v40  ;;  %vm2917_vm14 = vcmp.ne.s32.totalorder %v848_v39, 31  ;;  %v3637_v0 = vmov 0 }
 0x1c2   : > { %1335 = vmatprep.subr.mxu0 %v2649_v11  ;;  %v1255_v11 = vsel %vm3610_vm11, %v2797_v35, %v2815_v49 }
 0x1c3   : > { %1336 = vmatpush1.msra.mxu0 %v2621_v3  ;;  %v2881_v3 = vpop.permute.xlu1 %1243  ;;  %v841_v43 = vand.u32 31, %v817_v34 }
 0x1c4   : > { %2321 = vmatprep.subr.msk.mxu0 %vm2836_vm6, %v1083_v4  ;;  %v2871_v7 = vpop.permute.xlu0 %965 }
 0x1c5   : > { %2322 = vmatpush1.msk.msra.mxu0 %vm2841_vm8, %v1082_v6  ;;  %v981_v32 = vsel %vm3605_vm12, %v2799_v36, %v2871_v7  ;;  %vm2921_vm15 = vcmp.ne.s32.totalorder %v841_v43, 31  ;;  %v3639_v6 = vmov 0 }
 0x1c6   : > { %2323 = vmatprep.subr.msk.mxu0 %vm2817_vm2, %v1040_v8 }
 0x1c7   : > { %2324 = vmatpush1.msk.msra.mxu0 %vm2821_vm3, %v1039_v9  ;;  %v2912_v42 = vpop.permute.xlu1 %969 }
 0x1c8   : > { %1341 = vmatprep.subr.mxu0 %v1255_v11  ;;  %v1199_v26 = vpop.permute.xlu0 %1198 }
 0x1c9   : > { %1342 = vmatpush1.msra.mxu0 %v1254_v28  ;;  %v1213_v54 = vsel %vm3606_vm1, %v2771_v25, %v1199_v26 }
 0x1ca   : > { %2325 = vmatprep.subr.msk.mxu0 %vm2836_vm6, %v981_v32 }
 0x1cb   : > { %2326 = vmatpush1.msk.msra.mxu0 %vm2841_vm8, %v980_v37 }
 0x1cc   : > { %2327 = vmatmul.mubr.msk.f32.vlgmr.msra.gmra.mxu0 %vm3603_vm13, %v2898_v33  ;;  %v1277_v35 = vpop.permute.xlu0 %1276  ;;  %2343 = vmatprep.subr.msk.mxu0 %vm3602_vm0, %v2521_v12  ;;  %vm2945_vm13 = vcmp.ne.s32.totalorder %v841_v43, 0 }
 0x1cd   : > { %2344 = vmatpush1.msk.msra.mxu0 %vm3602_vm0, %v2521_v12  ;;  %1519 = vmatprep.mubr.f32.mxu0 %v2512_v10  ;;  %v1291_v63 = vsel %vm3607_vm4, %v2777_v27, %v1277_v35  ;;  %vm2941_vm0 = vcmp.ne.s32.totalorder %v848_v39, 0  ;;  %v3640_v6 = vsel %vm2945_vm13, 4294967295, %v3639_v6  ;;  %v820_v27 = vadd.s32 640, %v2803_v40 }
 0x1ce   : > { %v3638_v0 = vsel %vm2941_vm0, 4294967295, %v3637_v0  ;;  %v3641_v39 = vmov 0 }
 0x1cf   : > { %v862_v29 = vand.u32 31, %v820_v27  ;;  %v3648_v27 = vmov 0 }
 0x1d0   : > { %v1156_v36 = vpop.permute.xlu0 %1155 }
 0x1d1   : > { %v1201_v48 = vpop.permute.xlu1 %1200  ;;  %v1170_v9 = vsel %vm3604_vm5, %v2783_v30, %v1156_v36 }
 0x1d2   : > { %v1214_v53 = vsel %vm3606_vm1, %v1199_v26, %v1201_v48  ;;  %v819_v26 = vadd.s32 512, %v2803_v40 }
 0x1d3   : > { %2330 = vmatprep.subr.msk.mxu1 %vm2917_vm14, %v1214_v53 }
 0x1d4   : > { %2331 = vmatpush1.msk.msra.mxu1 %vm2921_vm15, %v1213_v54  ;;  %v1113_v56 = vpop.permute.xlu0 %1112  ;;  %v855_v34 = vand.u32 31, %v819_v26 }
 0x1d5   : > { %v2932_v58 = vpop.permute.xlu1 %1204 }
 0x1d6   : > { %vm2975_vm12 = vcmp.ne.s32.totalorder %v855_v34, 31 }
 0x1d8   : > { %v2934_v59 = vpop.permute.xlu0 %1073 }
 0x1d9   : > { %v1279_v61 = vpop.permute.xlu1 %1278 }
 0x1da   : > { %v1292_v62 = vsel %vm3607_vm4, %v1277_v35, %v1279_v61  ;;  %v1127_v35 = vsel %vm3611_vm7, %v2789_v31, %v1113_v56 }
 0x1db   : > { %1400 = vmatprep.subr.mxu1 %v1292_v62  ;;  %v1041_v62 = vsel %vm3608_vm10, %v2857_v1, %v2805_v41  ;;  %v3645_v1 = vmov 0 }
 0x1dc   : > { %1401 = vmatpush1.msra.mxu1 %v1291_v63  ;;  %v2939_v25 = vpop.permute.xlu0 %1030 }
 0x1dd   : > { %v1158_v4 = vpop.permute.xlu1 %1157 }
 0x1de   : > { %v1171_v8 = vsel %vm3604_vm5, %v1156_v36, %v1158_v4  ;;  %vm2969_vm5 = vcmp.ne.s32.totalorder %v862_v29, 31 }
 0x1df   : > { %2332 = vmatprep.subr.msk.mxu1 %vm2941_vm0, %v1171_v8  ;;  %v3642_v39 = vsel %vm2969_vm5, 4294967295, %v3641_v39  ;;  %v1257_v8 = vsel %vm3610_vm11, %v2808_v44, %v2881_v3 }
 0x1e0   : > { %2333 = vmatpush1.msk.msra.mxu1 %vm2945_vm13, %v1170_v9  ;;  %v2957_v11 = vpop.permute.xlu0 %1245 }
 0x1e1   : > { %v2960_v28 = vpop.permute.xlu1 %1282 }
 0x1e4   : > { %v2962_v32 = vpop.permute.xlu0 %971 }
 0x1e5   : > { %v1115_v37 = vpop.permute.xlu1 %1114 }
 0x1e6   : > { %v1128_v30 = vsel %vm3611_vm7, %v1113_v56, %v1115_v37  ;;  %v1085_v56 = vsel %vm3609_vm9, %v2801_v38, %v2830_v55 }
 0x1e7   : > { %2334 = vmatprep.subr.msk.mxu1 %vm2917_vm14, %v1128_v30 }
 0x1e8   : > { %2335 = vmatpush1.msk.msra.mxu1 %vm2921_vm15, %v1127_v35  ;;  %v1203_v43 = vpop.permute.xlu0 %1202 }
 0x1e9   : > { %1406 = vmatprep.subr.mxu1 %v2675_v13  ;;  %v2980_v53 = vpop.permute.xlu1 %1161  ;;  %v1215_v31 = vsel %vm3606_vm1, %v1201_v48, %v1203_v43  ;;  %v1216_v54 = vsel %vm3606_vm1, %v1203_v43, %v2932_v58  ;;  %v1084_v13 = vsel %vm3609_vm9, %v2810_v45, %v2801_v38  ;;  %vm3021_vm1 = vcmp.ne.s32.totalorder %v862_v29, 0 }
 0x1ea   : > { %1407 = vmatpush1.msra.mxu1 %v2623_v5  ;;  %2345 = vmatprep.subr.msk.mxu0 %vm2969_vm5, %v1216_v54  ;;  %v1042_v5 = vsel %vm3608_vm10, %v2805_v41, %v2859_v2  ;;  %v1256_v41 = vsel %vm3610_vm11, %v2815_v49, %v2808_v44  ;;  %v3646_v1 = vsel %vm3021_vm1, 4294967295, %v3645_v1  ;;  %vm3028_vm10 = vcmp.ne.s32.totalorder %v855_v34, 0 }
 0x1eb   : > { %2336 = vmatprep.subr.msk.mxu1 %vm2941_vm0, %v1085_v56  ;;  %2346 = vmatpush1.msk.msra.mxu0 %vm2975_vm12, %v1215_v31  ;;  %v3649_v27 = vsel %vm3028_vm10, 4294967295, %v3648_v27  ;;  %vm3651_vm11 = vcmask 793600  }
 0x1ec   : > { %2337 = vmatpush1.msk.msra.mxu1 %vm2945_vm13, %v1084_v13  ;;  %v1281_v48 = vpop.permute.xlu0 %1280  ;;  %vm3652_vm7 = vmmov %vm3651_vm11 }
 0x1ed   : > { %2338 = vmatprep.subr.msk.mxu1 %vm2917_vm14, %v1042_v5  ;;  %v3008_v38 = vpop.permute.xlu1 %1118  ;;  %v1293_v45 = vsel %vm3607_vm4, %v1279_v61, %v1281_v48  ;;  %v1294_v63 = vsel %vm3607_vm4, %v1281_v48, %v2960_v28  ;;  %vm3647_vm4 = vcmask 269312  }
 0x1ee   : > { %2339 = vmatpush1.msk.msra.mxu1 %vm2921_vm15, %v1041_v62  ;;  %1471 = vmatprep.subr.mxu0 %v1294_v63  ;;  %v983_v61 = vsel %vm3647_vm4, %v2812_v47, %v2912_v42  ;;  %vm3650_vm9 = vmmov %vm3647_vm4  ;;  %vm3653_vm4 = vcmask 596992  }
 0x1ef   : > { %1412 = vmatprep.subr.mxu1 %v1257_v8  ;;  %1472 = vmatpush1.msra.mxu0 %v1293_v45  ;;  %v982_v26 = vsel %vm3650_vm9, %v2871_v7, %v2812_v47  ;;  %v822_v47 = vadd.s32 896, %v2803_v40  ;;  %vm3654_vm9 = vcmask 1040384  }
 0x1f0   : > { %1413 = vmatpush1.msra.mxu1 %v1256_v41  ;;  %v1160_v9 = vpop.permute.xlu0 %1159 }
 0x1f1   : > { %2340 = vmatprep.subr.msk.mxu1 %vm2941_vm0, %v983_v61  ;;  %v3037_v44 = vpop.permute.xlu1 %1075  ;;  %v1172_v49 = vsel %vm3651_vm11, %v1158_v4, %v1160_v9  ;;  %v1173_v29 = vsel %vm3652_vm7, %v1160_v9, %v2980_v53  ;;  %v821_v4 = vadd.s32 768, %v2803_v40  ;;  %vm3655_vm7 = vcmask 1039360  }
 0x1f2   : > { %2341 = vmatpush1.msk.msra.mxu1 %vm2945_vm13, %v982_v26  ;;  %2347 = vmatprep.subr.msk.mxu0 %vm3021_vm1, %v1173_v29  ;;  %vm3656_vm11 = vmmov %vm3655_vm7  ;;  %v876_v43 = vand.u32 31, %v822_v47  ;;  %vm3670_vm0 = vcmask 269312  }
 0x1f3   : > { %2342 = vmatmul.mubr.msk.f32.vlgmr.msra.gmra.mxu1 %vm3653_vm4, %v2898_v33  ;;  %2348 = vmatpush1.msk.msra.mxu0 %vm3028_vm10, %v1172_v49  ;;  %vm3657_vm4 = vmmov %vm3654_vm9  ;;  %v869_v31 = vand.u32 31, %v821_v4 }
 0x1f4   : > { %v1117_v7 = vpop.permute.xlu0 %1116  ;;  %2358 = vmatprep.subr.msk.mxu1 %vm3654_vm9, %v2521_v12  ;;  %1590 = vmatprep.mubr.f32.mxu1 %v2512_v10  ;;  %vm3658_vm9 = vcmask 7168  }
 0x1f5   : > { %v3055_v34 = vpop.permute.xlu1 %1032  ;;  %v1129_v30 = vsel %vm3655_vm7, %v1115_v37, %v1117_v7  ;;  %v1130_v35 = vsel %vm3656_vm11, %v1117_v7, %v3008_v38  ;;  %2359 = vmatpush1.msk.msra.mxu1 %vm3657_vm4, %v2521_v12  ;;  %v1087_v37 = vsel %vm3658_vm9, %v2934_v59, %v3037_v44  ;;  %vm3659_vm7 = vmmov %vm3658_vm9  ;;  %vm3660_vm11 = vcmask 252928  }
 0x1f6   : > { %2349 = vmatprep.subr.msk.mxu0 %vm2969_vm5, %v1130_v35  ;;  %v1086_v56 = vsel %vm3659_vm7, %v2830_v55, %v2934_v59  ;;  %vm3081_vm4 = vcmp.ne.s32.totalorder %v876_v43, 31  ;;  %vm3663_vm9 = vmmov %vm3660_vm11  ;;  %vm3090_vm7 = vcmp.ne.s32.totalorder %v869_v31, 31 }
 0x1f7   : > { %2350 = vmatpush1.msk.msra.mxu0 %vm2975_vm12, %v1129_v30 }
 0x1f8   : > { %1477 = vmatprep.subr.mxu0 %v2727_v17  ;;  %v1078_v40 = vpop.permute.xlu0 %1077  ;;  %v1044_v17 = vsel %vm3660_vm11, %v2939_v25, %v3055_v34  ;;  %vm3666_vm11 = vcmask 777216  }
 0x1f9   : > { %v1248_v54 = vpop.permute.xlu1 %1247  ;;  %1478 = vmatpush1.msra.mxu0 %v2697_v14  ;;  %v1043_v14 = vsel %vm3663_vm9, %v2859_v2, %v2939_v25  ;;  %vm3667_vm13 = vmmov %vm3666_vm11  ;;  %vm3668_vm9 = vcmask 261120  }
 0x1fa   : > { %2351 = vmatprep.subr.msk.mxu0 %vm3021_vm1, %v1087_v37  ;;  %v1259_v2 = vsel %vm3668_vm9, %v2957_v11, %v1248_v54 }
 0x1fb   : > { %2352 = vmatpush1.msk.msra.mxu0 %vm3028_vm10, %v1086_v56 }
 0x1fc   : > { %2353 = vmatprep.subr.msk.mxu0 %vm2969_vm5, %v1044_v17  ;;  %v1207_v55 = vpop.permute.xlu0 %1206  ;;  %vm3669_vm5 = vmmov %vm3668_vm9  ;;  %vm3126_vm9 = vcmp.ne.s32.totalorder %v876_v43, 0 }
 0x1fd   : > { %v974_v5 = vpop.permute.xlu1 %973  ;;  %v1217_v48 = vsel %vm3666_vm11, %v2932_v58, %v1207_v55  ;;  %v1218_v62 = vsel %vm3667_vm13, %v1207_v55, %v2741_v19  ;;  %2354 = vmatpush1.msk.msra.mxu0 %vm2975_vm12, %v1043_v14  ;;  %v1258_v25 = vsel %vm3669_vm5, %v2881_v3, %v2957_v11  ;;  %vm3671_vm13 = vmmov %vm3670_vm0  ;;  %vm3672_vm5 = vcmask 785408  }
 0x1fe   : > { %1483 = vmatprep.subr.mxu0 %v1259_v2  ;;  %2360 = vmatprep.subr.msk.mxu1 %vm3081_vm4, %v1218_v62  ;;  %v985_v58 = vsel %vm3670_vm0, %v2962_v32, %v974_v5  ;;  %v984_v45 = vsel %vm3671_vm13, %v2912_v42, %v2962_v32  ;;  %vm3673_vm0 = vmmov %vm3672_vm5  ;;  %vm3674_vm11 = vcmask 596992   ;;  %vm3677_vm13 = vcmask 1040384  }
 0x1ff   : > { %1484 = vmatpush1.msra.mxu0 %v1258_v25  ;;  %2361 = vmatpush1.msk.msra.mxu1 %vm3090_vm7, %v1217_v48 }
 0x200   : > { %2355 = vmatprep.subr.msk.mxu0 %vm3021_vm1, %v985_v58  ;;  %v1285_v63 = vpop.permute.xlu0 %1284 }
 0x201   : > { %v3116_v3 = vpop.permute.xlu1 %1122  ;;  %v1295_v11 = vsel %vm3672_vm5, %v2960_v28, %v1285_v63  ;;  %2356 = vmatpush1.msk.msra.mxu0 %vm3028_vm10, %v984_v45  ;;  %v1296_v8 = vsel %vm3673_vm0, %v1285_v63, %v2749_v20  ;;  %vm3132_vm5 = vcmp.ne.s32.totalorder %v869_v31, 0  ;;  %v3678_v28 = vmov 0  ;;  %vm3680_vm10 = vmmov %vm3677_vm13 }
 0x202   : > { %2357 = vmatmul.mubr.msk.f32.vlgmr.msra.gmra.mxu0 %vm3674_vm11, %v2898_v33  ;;  %1542 = vmatprep.subr.mxu1 %v1296_v8  ;;  %v3679_v28 = vsel %vm3132_vm5, 4294967295, %v3678_v28  ;;  %vm3681_vm0 = vcmask 793600  }
 0x203   : > { %1543 = vmatpush1.msra.mxu1 %v1295_v11  ;;  %2373 = vmatprep.subr.msk.mxu0 %vm3677_vm13, %v2521_v12  ;;  %vm3682_vm11 = vmmov %vm3681_vm0  ;;  %vm3683_vm13 = vcmask 1039360  }
 0x204   : > { %v1164_v32 = vpop.permute.xlu0 %1163  ;;  %2374 = vmatpush1.msk.msra.mxu0 %vm3680_vm10, %v2521_v12  ;;  %1985 = vmatprep.mubr.f32.mxu0 %v2512_v10  ;;  %vm3684_vm10 = vmmov %vm3683_vm13 }
 0x205   : > { %v1080_v41 = vpop.permute.xlu1 %1079  ;;  %v1174_v61 = vsel %vm3681_vm0, %v2980_v53, %v1164_v32  ;;  %v1175_v9 = vsel %vm3682_vm11, %v1164_v32, %v2761_v23  ;;  %vm3685_vm0 = vcmask 7168  }
 0x206   : > { %2362 = vmatprep.subr.msk.mxu1 %vm3126_vm9, %v1175_v9  ;;  %v1089_v7 = vsel %vm3685_vm0, %v1078_v40, %v1080_v41  ;;  %vm3686_vm11 = vmmov %vm3685_vm0  ;;  %vm3689_vm0 = vcmask 261120  }
 0x207   : > { %2363 = vmatpush1.msk.msra.mxu1 %vm3132_vm5, %v1174_v61  ;;  %v1088_v4 = vsel %vm3686_vm11, %v3037_v44, %v1078_v40  ;;  %vm3690_vm11 = vmmov %vm3689_vm0 }
 0x208   : > { %v1121_v26 = vpop.permute.xlu0 %1120 }
 0x209   : > { %v1037_v49 = vpop.permute.xlu1 %1036  ;;  %v1131_v29 = vsel %vm3683_vm13, %v3008_v38, %v1121_v26  ;;  %v1132_v47 = vsel %vm3684_vm10, %v1121_v26, %v3116_v3  ;;  %vm3687_vm13 = vcmask 252928  }
 0x20a   : > { %2364 = vmatprep.subr.msk.mxu1 %vm3081_vm4, %v1132_v47  ;;  %vm3688_vm10 = vmmov %vm3687_vm13 }
 0x20b   : > { %2365 = vmatpush1.msk.msra.mxu1 %vm3090_vm7, %v1131_v29 }
 0x20c   : > { %1548 = vmatprep.subr.mxu1 %v2757_v22  ;;  %v1035_v53 = vpop.permute.xlu0 %1034 }
 0x20d   : > { %1549 = vmatpush1.msra.mxu1 %v2703_v15  ;;  %v1252_v38 = vpop.permute.xlu1 %1251  ;;  %v1046_v30 = vsel %vm3687_vm13, %v1035_v53, %v1037_v49  ;;  %v1045_v22 = vsel %vm3688_vm10, %v3055_v34, %v1035_v53  ;;  %vm3691_vm13 = vcmask 269312   ;;  %vm3693_vm10 = vcmask 596992  }
 0x20e   : > { %2366 = vmatprep.subr.msk.mxu1 %vm3126_vm9, %v1089_v7  ;;  %vm3692_vm1 = vmmov %vm3691_vm13 }
 0x20f   : > { %2367 = vmatpush1.msk.msra.mxu1 %vm3132_vm5, %v1088_v4 }
 0x210   : > { %2368 = vmatprep.subr.msk.mxu1 %vm3081_vm4, %v1046_v30  ;;  %v1250_v35 = vpop.permute.xlu0 %1249 }
 0x211   : > { %v1260_v15 = vsel %vm3689_vm0, %v1248_v54, %v1250_v35  ;;  %2369 = vmatpush1.msk.msra.mxu1 %vm3090_vm7, %v1045_v22  ;;  %v1261_v44 = vsel %vm3690_vm11, %v1250_v35, %v1252_v38  ;;  %v978_v43 = vpop.permute.xlu1 %977  ;;  %vm3694_vm0 = vcmask 1040384  }
 0x212   : > { %1554 = vmatprep.subr.mxu1 %v1261_v44  ;;  %vm3695_vm11 = vmmov %vm3694_vm0 }
 0x213   : > { %1555 = vmatpush1.msra.mxu1 %v1260_v15 }
 0x214   : > { %v976_v40 = vpop.permute.xlu0 %975 }
 0x215   : > { %v986_v31 = vsel %vm3691_vm13, %v974_v5, %v976_v40  ;;  %v987_v37 = vsel %vm3692_vm1, %v976_v40, %v978_v43  ;;  %vm3696_vm1 = vcmask 777216  }
 0x216   : > { %2370 = vmatprep.subr.msk.mxu1 %vm3126_vm9, %v987_v37  ;;  %vm3697_vm13 = vmmov %vm3696_vm1 }
 0x217   : > { %2371 = vmatpush1.msk.msra.mxu1 %vm3132_vm5, %v986_v31 }
 0x218   : > { %2372 = vmatmul.mubr.msk.f32.vlgmr.msra.gmra.mxu1 %vm3693_vm10, %v2898_v33  ;;  %2388 = vmatprep.subr.msk.mxu1 %vm3694_vm0, %v2521_v12  ;;  %vm3698_vm10 = vcmask 785408  }
 0x219   : > { %2389 = vmatpush1.msk.msra.mxu1 %vm3695_vm11, %v2521_v12  ;;  %2056 = vmatprep.mubr.f32.mxu1 %v2512_v10  ;;  %vm3699_vm0 = vmmov %vm3698_vm10  ;;  %vm3700_vm11 = vcmask 793600  }
 0x21a   : > { %vm3701_vm5 = vmmov %vm3700_vm11 }
 0x28c   : > { %v1379_v34 = vpop.f32.mrf.mxu0 }
 0x28d   : > { %v3186_v54 = vmax.f32 %v1379_v34, 0.0 }
 0x28e   : > { %v1381_v56 = vpop.f32.mrf.mxu0 }
 0x28f   : > { %1886 = vrot.lane.b32.xlu1 %v3186_v54, %s2518_s15  ;;  %1814 = vrot.lane.b32.xlu0 %v3186_v54, %s2517_s14  ;;  %v3196_v33 = vmax.f32 %v1381_v56, 0.0 }
 0x293   : > { %1734 = vrot.lane.b32.xlu1 %v3186_v54, %s2520_s17  ;;  %1774 = vrot.lane.b32.xlu0 %v3186_v54, %s2519_s16 }
 0x297   : > { %1694 = vrot.lane.b32.xlu0 %v3186_v54, %s2514_s11  ;;  %1888 = vrot.lane.b32.xlu1 %v3196_v33, %s2518_s15 }
 0x29b   : > { %1654 = vrot.lane.b32.xlu0 %v3186_v54, %s2513_s10  ;;  %1736 = vrot.lane.b32.xlu1 %v3196_v33, %s2520_s17 }
 0x29f   : > { %1854 = vrot.lane.b32.xlu0 %v3186_v54, %s2516_s13  ;;  %1696 = vrot.lane.b32.xlu1 %v3196_v33, %s2514_s11 }
 0x2a3   : > { %1614 = vrot.lane.b32.xlu0 %v3186_v54, %s2515_s12  ;;  %1656 = vrot.lane.b32.xlu1 %v3196_v33, %s2513_s10 }
 0x2a7   : > { %1856 = vrot.lane.b32.xlu1 %v3196_v33, %s2516_s13  ;;  %1816 = vrot.lane.b32.xlu0 %v3196_v33, %s2517_s14 }
 0x2ab   : > { %1616 = vrot.lane.b32.xlu1 %v3196_v33, %s2515_s12  ;;  %1776 = vrot.lane.b32.xlu0 %v3196_v33, %s2519_s16 }
 0x2b3   : > { %v1450_v17 = vpop.f32.mrf.mxu1 }
 0x2b4   : > { %v3222_v14 = vmax.f32 %v1450_v17, 0.0 }
 0x2b5   : > { %v1452_v48 = vpop.f32.mrf.mxu1 }
 0x2b6   : > { %1818 = vrot.lane.b32.xlu1 %v3222_v14, %s2517_s14  ;;  %1890 = vrot.lane.b32.xlu0 %v3222_v14, %s2518_s15  ;;  %v3242_v62 = vmax.f32 %v1452_v48, 0.0 }
 0x2ba   : > { %1778 = vrot.lane.b32.xlu1 %v3222_v14, %s2519_s16  ;;  %1738 = vrot.lane.b32.xlu0 %v3222_v14, %s2520_s17 }
 0x2be   : > { %1698 = vrot.lane.b32.xlu0 %v3222_v14, %s2514_s11 }
 0x2c2   : > { %1658 = vrot.lane.b32.xlu0 %v3222_v14, %s2513_s10  ;;  %v1521_v55 = vpop.f32.mrf.mxu0 }
 0x2c3   : > { %v3236_v5 = vmax.f32 %v1521_v55, 0.0 }
 0x2c4   : > { %v1523_v2 = vpop.f32.mrf.mxu0 }
 0x2c5   : > { %1822 = vrot.lane.b32.xlu1 %v3236_v5, %s2517_s14  ;;  %v3272_v25 = vmax.f32 %v1523_v2, 0.0 }
 0x2c6   : > { %1858 = vrot.lane.b32.xlu0 %v3222_v14, %s2516_s13 }
 0x2c9   : > { %1892 = vrot.lane.b32.xlu1 %v3242_v62, %s2518_s15 }
 0x2ca   : > { %1618 = vrot.lane.b32.xlu0 %v3222_v14, %s2515_s12 }
 0x2cd   : > { %1782 = vrot.lane.b32.xlu1 %v3236_v5, %s2519_s16 }
 0x2ce   : > { %1820 = vrot.lane.b32.xlu0 %v3242_v62, %s2517_s14 }
 0x2d1   : > { %1740 = vrot.lane.b32.xlu1 %v3242_v62, %s2520_s17 }
 0x2d2   : > { %1894 = vrot.lane.b32.xlu0 %v3236_v5, %s2518_s15 }
 0x2d5   : > { %1700 = vrot.lane.b32.xlu1 %v3242_v62, %s2514_s11 }
 0x2d6   : > { %1780 = vrot.lane.b32.xlu0 %v3242_v62, %s2519_s16 }
 0x2d8   : > { %v1592_v58 = vpop.f32.mrf.mxu1 }
 0x2d9   : > { %1660 = vrot.lane.b32.xlu1 %v3242_v62, %s2513_s10  ;;  %v3286_v45 = vmax.f32 %v1592_v58, 0.0 }
 0x2da   : > { %1742 = vrot.lane.b32.xlu0 %v3236_v5, %s2520_s17  ;;  %v1594_v63 = vpop.f32.mrf.mxu1 }
 0x2db   : > { %v3304_v11 = vmax.f32 %v1594_v63, 0.0 }
 0x2dd   : > { %1860 = vrot.lane.b32.xlu1 %v3242_v62, %s2516_s13 }
 0x2de   : > { %1702 = vrot.lane.b32.xlu0 %v3236_v5, %s2514_s11 }
 0x2e1   : > { %1620 = vrot.lane.b32.xlu1 %v3242_v62, %s2515_s12 }
 0x2e2   : > { %1662 = vrot.lane.b32.xlu0 %v3236_v5, %s2513_s10 }
 0x2e5   : > { %1896 = vrot.lane.b32.xlu1 %v3272_v25, %s2518_s15 }
 0x2e6   : > { %1862 = vrot.lane.b32.xlu0 %v3236_v5, %s2516_s13 }
 0x2e9   : > { %1744 = vrot.lane.b32.xlu1 %v3272_v25, %s2520_s17 }
 0x2ea   : > { %1824 = vrot.lane.b32.xlu0 %v3272_v25, %s2517_s14 }
 0x2ed   : > { %1704 = vrot.lane.b32.xlu1 %v3272_v25, %s2514_s11 }
 0x2ee   : > { %1784 = vrot.lane.b32.xlu0 %v3272_v25, %s2519_s16 }
 0x2f1   : > { %1664 = vrot.lane.b32.xlu1 %v3272_v25, %s2513_s10 }
 0x2f2   : > { %1898 = vrot.lane.b32.xlu0 %v3286_v45, %s2518_s15 }
 0x2f5   : > { %1864 = vrot.lane.b32.xlu1 %v3272_v25, %s2516_s13 }
 0x2f6   : > { %1746 = vrot.lane.b32.xlu0 %v3286_v45, %s2520_s17 }
 0x2f9   : > { %1826 = vrot.lane.b32.xlu1 %v3286_v45, %s2517_s14 }
 0x2fa   : > { %1706 = vrot.lane.b32.xlu0 %v3286_v45, %s2514_s11 }
 0x2fd   : > { %1786 = vrot.lane.b32.xlu1 %v3286_v45, %s2519_s16 }
 0x2fe   : > { %1666 = vrot.lane.b32.xlu0 %v3286_v45, %s2513_s10 }
 0x301   : > { %v1887_v8 = vpop.permute.xlu1 %1886  ;;  %v1815_v32 = vpop.permute.xlu0 %1814  ;;  %1900 = vrot.lane.b32.xlu1 %v3304_v11, %s2518_s15 }
 0x302   : > { %1828 = vrot.lane.b32.xlu0 %v3304_v11, %s2517_s14 }
 0x305   : > { %v1735_v41 = vpop.permute.xlu1 %1734  ;;  %v1775_v61 = vpop.permute.xlu0 %1774  ;;  %1624 = vrot.lane.b32.xlu1 %v3272_v25, %s2515_s12 }
 0x306   : > { %1788 = vrot.lane.b32.xlu0 %v3304_v11, %s2519_s16 }
 0x309   : > { %v1695_v9 = vpop.permute.xlu0 %1694  ;;  %v1889_v26 = vpop.permute.xlu1 %1888  ;;  %1748 = vrot.lane.b32.xlu1 %v3304_v11, %s2520_s17 }
 0x30a   : > { %1866 = vrot.lane.b32.xlu0 %v3286_v45, %s2516_s13  ;;  %v1902_v37 = vsel %vm3699_vm0, %v1887_v8, %v1889_v26  ;;  %vm3706_vm0 = vcmask 252928  }
 0x30d   : > { %v1655_v49 = vpop.permute.xlu0 %1654  ;;  %v1737_v29 = vpop.permute.xlu1 %1736  ;;  %1708 = vrot.lane.b32.xlu1 %v3304_v11, %s2514_s11 }
 0x30e   : > { %1622 = vrot.lane.b32.xlu0 %v3236_v5, %s2515_s12 }
 0x311   : > { %1668 = vrot.lane.b32.xlu1 %v3304_v11, %s2513_s10  ;;  %v1855_v47 = vpop.permute.xlu0 %1854  ;;  %v3324_v53 = vpop.permute.xlu1 %1696 }
 0x312   : > { %1626 = vrot.lane.b32.xlu0 %v3286_v45, %s2515_s12 }
 0x315   : > { %1868 = vrot.lane.b32.xlu1 %v3304_v11, %s2516_s13  ;;  %v1615_v7 = vpop.permute.xlu0 %1614  ;;  %v3330_v4 = vpop.permute.xlu1 %1656 }
 0x319   : > { %1628 = vrot.lane.b32.xlu1 %v3304_v11, %s2515_s12  ;;  %v3334_v38 = vpop.permute.xlu1 %1856  ;;  %v1817_v30 = vpop.permute.xlu0 %1816 }
 0x31a   : > { %v1830_v40 = vsel %vm3697_vm13, %v1815_v32, %v1817_v30 }
 0x31d   : > { %v3336_v22 = vpop.permute.xlu1 %1616  ;;  %v1777_v35 = vpop.permute.xlu0 %1776 }
 0x31e   : > { %v1790_v55 = vsel %vm3701_vm5, %v1775_v61, %v1777_v35  ;;  %vm3704_vm5 = vcmask 7168  }
 0x31f   : > { %v1711_v63 = vsel %vm3704_vm5, %v1695_v9, %v3324_v53 }
 0x328   : > { %v1819_v15 = vpop.permute.xlu1 %1818  ;;  %v1891_v44 = vpop.permute.xlu0 %1890 }
 0x329   : > { %v1831_v43 = vsel %vm3696_vm1, %v1817_v30, %v1819_v15  ;;  %v1903_v31 = vsel %vm3698_vm10, %v1889_v26, %v1891_v44  ;;  %vm3702_vm1 = vcmask 1039360   ;;  %vm3705_vm10 = vmmov %vm3704_vm5  ;;  %vm3710_vm5 = vcmask 269312  }
 0x32a   : > { %2375 = vmatprep.subr.msk.mxu0 %vm2817_vm2, %v1831_v43  ;;  %vm3703_vm13 = vmmov %vm3702_vm1  ;;  %v1710_v8 = vsel %vm3705_vm10, %v2751_v21, %v1695_v9  ;;  %v1631_v26 = vsel %vm3710_vm5, %v1615_v7, %v3336_v22  ;;  %vm3713_vm10 = vcmask 596992  }
 0x32b   : > { %2376 = vmatpush1.msk.msra.mxu0 %vm2821_vm3, %v1830_v40  ;;  %v1750_v2 = vsel %vm3703_vm13, %v1735_v41, %v1737_v29  ;;  %v1671_v41 = vsel %vm3706_vm0, %v1655_v49, %v3330_v4 }
 0x32c   : > { %v1779_v34 = vpop.permute.xlu1 %1778  ;;  %1937 = vmatprep.subr.mxu0 %v1903_v31  ;;  %v1739_v56 = vpop.permute.xlu0 %1738 }
 0x32d   : > { %v1791_v17 = vsel %vm3700_vm11, %v1777_v35, %v1779_v34  ;;  %1938 = vmatpush1.msra.mxu0 %v1902_v37  ;;  %v1751_v48 = vsel %vm3702_vm1, %v1737_v29, %v1739_v56  ;;  %vm3707_vm11 = vmmov %vm3706_vm0  ;;  %vm3708_vm1 = vcmask 261120  }
 0x32e   : > { %2377 = vmatprep.subr.msk.mxu0 %vm2836_vm6, %v1791_v17  ;;  %v1871_v21 = vsel %vm3708_vm1, %v1855_v47, %v3334_v38  ;;  %vm3709_vm13 = vmmov %vm3708_vm1 }
 0x32f   : > { %2378 = vmatpush1.msk.msra.mxu0 %vm2841_vm8, %v1790_v55  ;;  %v1870_v61 = vsel %vm3709_vm13, %v2763_v24, %v1855_v47  ;;  %vm3719_vm13 = vcmask 793600  }
 0x330   : > { %2379 = vmatprep.subr.msk.mxu0 %vm2817_vm2, %v1751_v48  ;;  %v1699_v58 = vpop.permute.xlu0 %1698 }
 0x331   : > { %2380 = vmatpush1.msk.msra.mxu0 %vm2821_vm3, %v1750_v2 }
 0x332   : > { %1943 = vmatprep.subr.mxu0 %v3196_v33  ;;  %v1670_v33 = vsel %vm3707_vm11, %v2723_v16, %v1655_v49  ;;  %v3387_v16 = vld [vmem:[%s3600_s4] sm:$0xff]  ;;  %vm3717_vm11 = vcmask 785408  }
 0x333   : > { %1944 = vmatpush1.msra.mxu0 %v3186_v54  ;;  %vm3718_vm1 = vmmov %vm3717_vm11 }
 0x334   : > { %2381 = vmatprep.subr.msk.mxu0 %vm2836_vm6, %v1711_v63  ;;  %v1659_v32 = vpop.permute.xlu0 %1658 }
 0x335   : > { %2382 = vmatpush1.msk.msra.mxu0 %vm2841_vm8, %v1710_v8 }
 0x336   : > { %2383 = vmatprep.subr.msk.mxu0 %vm2817_vm2, %v1671_v41  ;;  %vm3711_vm2 = vmmov %vm3710_vm5 }
 0x337   : > { %2384 = vmatpush1.msk.msra.mxu0 %vm2821_vm3, %v1670_v33  ;;  %v3378_v54 = vpop.permute.xlu1 %1822  ;;  %v1630_v50 = vsel %vm3711_vm2, %v2733_v18, %v1615_v7  ;;  %vm3712_vm3 = vcmask 1040384   ;;  %vm3720_vm5 = vmmov %vm3719_vm13  ;;  %vm3721_vm2 = vnez %v3638_v0 }
 0x338   : > { %1949 = vmatprep.subr.mxu0 %v1871_v21  ;;  %v1859_v9 = vpop.permute.xlu0 %1858  ;;  %vm3714_vm0 = vmmov %vm3712_vm3 }
 0x339   : > { %1950 = vmatpush1.msra.mxu0 %v1870_v61 }
 0x33a   : > { %2385 = vmatprep.subr.msk.mxu0 %vm2836_vm6, %v1631_v26  ;;  %vm3715_vm6 = vcmask 777216  }
 0x33b   : > { %2386 = vmatpush1.msk.msra.mxu0 %vm2841_vm8, %v1630_v50  ;;  %v1893_v24 = vpop.permute.xlu1 %1892  ;;  %vm3716_vm8 = vmmov %vm3715_vm6 }
 0x33c   : > { %v1619_v52 = vpop.permute.xlu0 %1618  ;;  %2403 = vmatprep.subr.msk.mxu0 %vm3712_vm3, %v2521_v12  ;;  %2387 = vmatmul.mubr.msk.f32.vlgmr.msra.gmra.mxu0 %vm3713_vm10, %v3387_v16  ;;  %v1904_v30 = vsel %vm3718_vm1, %v1891_v44, %v1893_v24  ;;  %vm3722_vm3 = vnez %v3640_v6  ;;  %vm3723_vm10 = vcmask 1039360  }
 0x33d   : > { %2404 = vmatpush1.msk.msra.mxu0 %vm3714_vm0, %v2521_v12  ;;  %2127 = vmatprep.mubr.f32.mxu0 %v2512_v10  ;;  %vm3724_vm0 = vmmov %vm3723_vm10 }
 0x33f   : > { %v3402_v18 = vpop.permute.xlu1 %1782 }
 0x340   : > { %v1821_v57 = vpop.permute.xlu0 %1820 }
 0x341   : > { %v1832_v49 = vsel %vm3715_vm6, %v1819_v15, %v1821_v57  ;;  %v1833_v60 = vsel %vm3716_vm8, %v1821_v57, %v3378_v54  ;;  %vm3725_vm6 = vcmask 7168  }
 0x342   : > { %2390 = vmatprep.subr.msk.mxu1 %vm2917_vm14, %v1833_v60  ;;  %vm3726_vm8 = vmmov %vm3725_vm6 }
 0x343   : > { %2391 = vmatpush1.msk.msra.mxu1 %vm2921_vm15, %v1832_v49  ;;  %v1741_v29 = vpop.permute.xlu1 %1740 }
 0x344   : > { %v1895_v47 = vpop.permute.xlu0 %1894  ;;  %v1752_v17 = vsel %vm3724_vm0, %v1739_v56, %v1741_v29  ;;  %v1712_v56 = vsel %vm3726_vm8, %v3324_v53, %v1699_v58  ;;  %vm3738_vm8 = vnez %v3642_v39 }
 0x345   : > { %v1905_v7 = vsel %vm3717_vm11, %v1893_v24, %v1895_v47  ;;  %vm3727_vm11 = vcmask 252928  }
 0x346   : > { %2008 = vmatprep.subr.mxu1 %v1905_v7  ;;  %vm3728_vm1 = vmmov %vm3727_vm11 }
 0x347   : > { %2009 = vmatpush1.msra.mxu1 %v1904_v30  ;;  %v3413_v35 = vpop.permute.xlu1 %1700 }
 0x348   : > { %v1781_v15 = vpop.permute.xlu0 %1780  ;;  %v1713_v48 = vsel %vm3725_vm6, %v1699_v58, %v3413_v35 }
 0x349   : > { %v1792_v43 = vsel %vm3719_vm13, %v1779_v34, %v1781_v15  ;;  %v1793_v40 = vsel %vm3720_vm5, %v1781_v15, %v3402_v18  ;;  %vm3729_vm13 = vcmask 261120  }
 0x34a   : > { %2392 = vmatprep.subr.msk.mxu1 %vm3721_vm2, %v1793_v40  ;;  %vm3730_vm5 = vmmov %vm3729_vm13 }
 0x34b   : > { %2393 = vmatpush1.msk.msra.mxu1 %vm3722_vm3, %v1792_v43  ;;  %v3422_v31 = vpop.permute.xlu1 %1660  ;;  %v1872_v53 = vsel %vm3730_vm5, %v3334_v38, %v1859_v9 }
 0x34c   : > { %v1743_v37 = vpop.permute.xlu0 %1742  ;;  %v1673_v2 = vsel %vm3727_vm11, %v1659_v32, %v3422_v31  ;;  %vm3739_vm11 = vcmask 785408  }
 0x34d   : > { %v1753_v44 = vsel %vm3723_vm10, %v1741_v29, %v1743_v37  ;;  %vm3731_vm10 = vcmask 269312  }
 0x34e   : > { %2394 = vmatprep.subr.msk.mxu1 %vm2917_vm14, %v1753_v44  ;;  %vm3732_vm0 = vmmov %vm3731_vm10 }
 0x34f   : > { %2395 = vmatpush1.msk.msra.mxu1 %vm2921_vm15, %v1752_v17  ;;  %v3430_v34 = vpop.permute.xlu1 %1860 }
 0x350   : > { %v3432_v55 = vpop.permute.xlu0 %1702  ;;  %2014 = vmatprep.subr.mxu1 %v3242_v62  ;;  %v1672_v62 = vsel %vm3728_vm1, %v3330_v4, %v1659_v32  ;;  %v1632_v32 = vsel %vm3732_vm0, %v3336_v22, %v1619_v52  ;;  %vm3740_vm1 = vmmov %vm3739_vm11  ;;  %vm3744_vm0 = vcmask 1039360  }
 0x351   : > { %2015 = vmatpush1.msra.mxu1 %v3222_v14  ;;  %v1873_v14 = vsel %vm3729_vm13, %v1859_v9, %v3430_v34  ;;  %vm3741_vm13 = vcmask 793600  }
 0x352   : > { %2396 = vmatprep.subr.msk.mxu1 %vm3721_vm2, %v1713_v48  ;;  %vm3742_vm5 = vmmov %vm3741_vm13 }
 0x353   : > { %2397 = vmatpush1.msk.msra.mxu1 %vm3722_vm3, %v1712_v56  ;;  %v3446_v63 = vpop.permute.xlu1 %1620 }
 0x354   : > { %v3450_v8 = vpop.permute.xlu0 %1662  ;;  %2398 = vmatprep.subr.msk.mxu1 %vm2917_vm14, %v1673_v2  ;;  %v1633_v58 = vsel %vm3731_vm10, %v1619_v52, %v3446_v63  ;;  %vm3733_vm14 = vcmask 1040384   ;;  %vm3743_vm10 = vnez %v3646_v1 }
 0x355   : > { %2399 = vmatpush1.msk.msra.mxu1 %vm2921_vm15, %v1672_v62  ;;  %vm3734_vm15 = vcmask 596992   ;;  %vm3735_vm6 = vmmov %vm3733_vm14 }
 0x356   : > { %2020 = vmatprep.subr.mxu1 %v1873_v14 }
 0x357   : > { %2021 = vmatpush1.msra.mxu1 %v1872_v53  ;;  %v1897_v4 = vpop.permute.xlu1 %1896 }
 0x358   : > { %v1863_v46 = vpop.permute.xlu0 %1862  ;;  %2400 = vmatprep.subr.msk.mxu1 %vm3721_vm2, %v1633_v58  ;;  %vm3736_vm2 = vcmask 777216  }
 0x359   : > { %2401 = vmatpush1.msk.msra.mxu1 %vm3722_vm3, %v1632_v32  ;;  %vm3737_vm3 = vmmov %vm3736_vm2 }
 0x35a   : > { %2418 = vmatprep.subr.msk.mxu1 %vm3733_vm14, %v2521_v12  ;;  %2402 = vmatmul.mubr.msk.f32.vlgmr.msra.gmra.mxu1 %vm3734_vm15, %v3387_v16  ;;  %vm3745_vm14 = vnez %v3649_v27  ;;  %vm3746_vm15 = vmmov %vm3744_vm0 }
 0x35b   : > { %v1745_v51 = vpop.permute.xlu1 %1744  ;;  %2419 = vmatpush1.msk.msra.mxu1 %vm3735_vm6, %v2521_v12  ;;  %2198 = vmatprep.mubr.f32.mxu1 %v2512_v10  ;;  %v1906_v12 = vsel %vm3740_vm1, %v1895_v47, %v1897_v4  ;;  %vm3747_vm6 = vmmov %vm3736_vm2 }
 0x35c   : > { %v1825_v38 = vpop.permute.xlu0 %1824  ;;  %v1754_v60 = vsel %vm3746_vm15, %v1743_v37, %v1745_v51  ;;  %vm3753_vm15 = vcmask 793600  }
 0x35d   : > { %v1834_v50 = vsel %vm3737_vm3, %v3378_v54, %v1825_v38  ;;  %vm3748_vm3 = vcmask 7168  }
 0x35f   : > { %v3475_v22 = vpop.permute.xlu1 %1704 }
 0x360   : > { %v1785_v0 = vpop.permute.xlu0 %1784  ;;  %v1715_v30 = vsel %vm3748_vm3, %v3432_v55, %v3475_v22 }
 0x361   : > { %v1794_v49 = vsel %vm3742_vm5, %v3402_v18, %v1785_v0  ;;  %vm3751_vm5 = vmmov %vm3740_vm1 }
 0x363   : > { %v3477_v41 = vpop.permute.xlu1 %1664 }
 0x364   : > { %v1899_v6 = vpop.permute.xlu0 %1898 }
 0x365   : > { %v1907_v10 = vsel %vm3739_vm11, %v1897_v4, %v1899_v6  ;;  %vm3749_vm11 = vmmov %vm3748_vm3 }
 0x366   : > { %v1714_v15 = vsel %vm3749_vm11, %v3413_v35, %v3432_v55  ;;  %vm3757_vm11 = vnez %v3679_v28 }
 0x367   : > { %v3479_v33 = vpop.permute.xlu1 %1864 }
 0x368   : > { %v1747_v21 = vpop.permute.xlu0 %1746 }
 0x369   : > { %v1755_v54 = vsel %vm3744_vm0, %v1745_v51, %v1747_v21 }
 0x36b   : > { %v1827_v61 = vpop.permute.xlu1 %1826 }
 0x36c   : > { %v1835_v9 = vsel %vm3736_vm2, %v1825_v38, %v1827_v61  ;;  %v1707_v26 = vpop.permute.xlu0 %1706 }
 0x36d   : > { %2405 = vmatprep.subr.msk.mxu0 %vm3738_vm8, %v1835_v9 }
 0x36e   : > { %2406 = vmatpush1.msk.msra.mxu0 %vm2975_vm12, %v1834_v50 }
 0x36f   : > { %v1787_v24 = vpop.permute.xlu1 %1786  ;;  %2079 = vmatprep.subr.mxu0 %v1907_v10 }
 0x370   : > { %v1795_v52 = vsel %vm3741_vm13, %v1785_v0, %v1787_v24  ;;  %v1667_v57 = vpop.permute.xlu0 %1666  ;;  %2080 = vmatpush1.msra.mxu0 %v1906_v12  ;;  %vm3750_vm13 = vcmask 252928  }
 0x371   : > { %2407 = vmatprep.subr.msk.mxu0 %vm3743_vm10, %v1795_v52  ;;  %vm3752_vm0 = vmmov %vm3750_vm13 }
 0x372   : > { %2408 = vmatpush1.msk.msra.mxu0 %vm3745_vm14, %v1794_v49  ;;  %v1674_v35 = vsel %vm3752_vm0, %v3422_v31, %v3450_v8 }
 0x373   : > { %v1901_v29 = vpop.permute.xlu1 %1900  ;;  %2409 = vmatprep.subr.msk.mxu0 %vm3738_vm8, %v1755_v54 }
 0x374   : > { %v1829_v47 = vpop.permute.xlu0 %1828  ;;  %2410 = vmatpush1.msk.msra.mxu0 %vm2975_vm12, %v1754_v60 }
 0x375   : > { %v1836_v18 = vsel %vm3747_vm6, %v1827_v61, %v1829_v47  ;;  %v1837_v7 = vsel %vm3736_vm2, %v1829_v47, %v2741_v19  ;;  %2085 = vmatprep.subr.mxu0 %v3272_v25  ;;  %v1909_v19 = vsel %vm3740_vm1, %v1901_v29, %v2749_v20  ;;  %v1675_v25 = vsel %vm3750_vm13, %v3450_v8, %v3477_v41  ;;  %vm3754_vm6 = vmmov %vm3753_vm15 }
 0x376   : > { %2420 = vmatprep.subr.msk.mxu1 %vm3081_vm4, %v1837_v7  ;;  %2086 = vmatpush1.msra.mxu0 %v3236_v5  ;;  %v1908_v5 = vsel %vm3751_vm5, %v1899_v6, %v1901_v29  ;;  %vm3755_vm2 = vcmask 261120   ;;  %vm3758_vm1 = vcmask 1039360   ;;  %vm3762_vm5 = vcmask 269312  }
 0x377   : > { %2421 = vmatpush1.msk.msra.mxu1 %vm3090_vm7, %v1836_v18  ;;  %v1625_v43 = vpop.permute.xlu1 %1624  ;;  %2411 = vmatprep.subr.msk.mxu0 %vm3743_vm10, %v1715_v30  ;;  %v1875_v44 = vsel %vm3755_vm2, %v1863_v46, %v3479_v33  ;;  %vm3756_vm3 = vmmov %vm3755_vm2 }
 0x378   : > { %2150 = vmatprep.subr.mxu1 %v1909_v19  ;;  %v1789_v40 = vpop.permute.xlu0 %1788  ;;  %2412 = vmatpush1.msk.msra.mxu0 %vm3745_vm14, %v1714_v15  ;;  %v1874_v31 = vsel %vm3756_vm3, %v3430_v34, %v1863_v46  ;;  %vm3763_vm0 = vmmov %vm3762_vm5 }
 0x379   : > { %v1796_v37 = vsel %vm3753_vm15, %v1787_v24, %v1789_v40  ;;  %v1797_v20 = vsel %vm3754_vm6, %v1789_v40, %v2761_v23  ;;  %2151 = vmatpush1.msra.mxu1 %v1908_v5  ;;  %2413 = vmatprep.subr.msk.mxu0 %vm3738_vm8, %v1675_v25  ;;  %vm3759_vm8 = vmmov %vm3758_vm1  ;;  %vm3764_vm15 = vcmask 252928   ;;  %vm3765_vm6 = vcmask 596992  }
 0x37a   : > { %2422 = vmatprep.subr.msk.mxu1 %vm3126_vm9, %v1797_v20  ;;  %2414 = vmatpush1.msk.msra.mxu0 %vm2975_vm12, %v1674_v35  ;;  %vm3760_vm12 = vcmask 7168   ;;  %vm3766_vm2 = vmmov %vm3764_vm15 }
 0x37b   : > { %2423 = vmatpush1.msk.msra.mxu1 %vm3757_vm11, %v1796_v37  ;;  %v1749_v23 = vpop.permute.xlu1 %1748  ;;  %2091 = vmatprep.subr.mxu0 %v1875_v44  ;;  %vm3761_vm13 = vmmov %vm3760_vm12 }
 0x37c   : > { %v1756_v39 = vsel %vm3758_vm1, %v1747_v21, %v1749_v23  ;;  %v1757_v17 = vsel %vm3759_vm8, %v1749_v23, %v3116_v3  ;;  %v1867_v55 = vpop.permute.xlu0 %1866  ;;  %2092 = vmatpush1.msra.mxu0 %v1874_v31  ;;  %v1716_v56 = vsel %vm3761_vm13, %v3475_v22, %v1707_v26  ;;  %vm3770_vm1 = vmmov %vm3763_vm0 }
 0x37d   : > { %2424 = vmatprep.subr.msk.mxu1 %vm3081_vm4, %v1757_v17 }
 0x37e   : > { %2425 = vmatpush1.msk.msra.mxu1 %vm3090_vm7, %v1756_v39 }
 0x37f   : > { %v1709_v36 = vpop.permute.xlu1 %1708  ;;  %2156 = vmatprep.subr.mxu1 %v3304_v11 }
 0x380   : > { %v1717_v34 = vsel %vm3760_vm12, %v1707_v26, %v1709_v36  ;;  %v1623_v48 = vpop.permute.xlu0 %1622  ;;  %2157 = vmatpush1.msra.mxu1 %v3286_v45 }
 0x381   : > { %v1634_v3 = vsel %vm3762_vm5, %v3446_v63, %v1623_v48  ;;  %v1635_v2 = vsel %vm3763_vm0, %v1623_v48, %v1625_v43  ;;  %2426 = vmatprep.subr.msk.mxu1 %vm3126_vm9, %v1717_v34  ;;  %v1676_v63 = vsel %vm3766_vm2, %v3477_v41, %v1667_v57 }
 0x382   : > { %2415 = vmatprep.subr.msk.mxu0 %vm3743_vm10, %v1635_v2  ;;  %2427 = vmatpush1.msk.msra.mxu1 %vm3757_vm11, %v1716_v56  ;;  %vm3767_vm10 = vmmov %vm3756_vm3 }
 0x383   : > { %2416 = vmatpush1.msk.msra.mxu0 %vm3745_vm14, %v1634_v3  ;;  %v1669_v45 = vpop.permute.xlu1 %1668  ;;  %vm3768_vm14 = vmmov %vm3756_vm3 }
 0x384   : > { %v1677_v11 = vsel %vm3764_vm15, %v1667_v57, %v1669_v45  ;;  %2417 = vmatmul.mubr.msk.f32.vlgmr.msra.gmra.mxu0 %vm3765_vm6, %v3387_v16  ;;  %v1876_v62 = vsel %vm3768_vm14, %v3479_v33, %v1867_v55  ;;  %v1627_v8 = vpop.permute.xlu0 %1626  ;;  %vm3769_vm3 = vmmov %vm3763_vm0 }
 0x385   : > { %2428 = vmatprep.subr.msk.mxu1 %vm3081_vm4, %v1677_v11  ;;  %v1636_v58 = vsel %vm3770_vm1, %v1625_v43, %v1627_v8  ;;  %vm3771_vm4 = vmmov %vm3765_vm6 }
 0x386   : > { %2429 = vmatpush1.msk.msra.mxu1 %vm3090_vm7, %v1676_v63 }
 0x387   : > { %v1869_v1 = vpop.permute.xlu1 %1868 }
 0x388   : > { %v1877_v27 = vsel %vm3767_vm10, %v1867_v55, %v1869_v1 }
 0x389   : > { %2162 = vmatprep.subr.mxu1 %v1877_v27 }
 0x38a   : > { %2163 = vmatpush1.msra.mxu1 %v1876_v62 }
 0x38b   : > { %v1629_v14 = vpop.permute.xlu1 %1628 }
 0x38c   : > { %v1637_v53 = vsel %vm3769_vm3, %v1627_v8, %v1629_v14 }
 0x38d   : > { %2430 = vmatprep.subr.msk.mxu1 %vm3126_vm9, %v1637_v53 }
 0x38e   : > { %2431 = vmatpush1.msk.msra.mxu1 %vm3757_vm11, %v1636_v58 }
 0x38f   : > { %2432 = vmatmul.mubr.msk.f32.vlgmr.msra.gmra.mxu1 %vm3771_vm4, %v3387_v16 }
 0x3fc   : > { %v1987_v13 = vpop.f32.mrf.mxu0 }
 0x3fd   : > { %v2205_v59 = vmax.f32 %v1987_v13, 0.0 }
 0x3fe   : > { %v1989_v4 = vpop.f32.mrf.mxu0 }
 0x3ff   : > { %2213 = vst [vmem:[%s259_s27] sm:$0xff] %v2205_v59  ;;  %v2206_v32 = vmax.f32 %v1989_v4, 0.0 }
 0x401   : > { %2214 = vst [vmem:[%s259_s27 + $0x8] sm:$0xff] %v2206_v32 }
 0x41a   : > { %v2058_v46 = vpop.f32.mrf.mxu1 }
 0x41b   : > { %v2207_v42 = vmax.f32 %v2058_v46, 0.0 }
 0x41c   : > { %v2060_v51 = vpop.f32.mrf.mxu1 }
 0x41d   : > { %2215 = vst [vmem:[%s259_s27 + $0x10] sm:$0xff] %v2207_v42  ;;  %v2208_v28 = vmax.f32 %v2060_v51, 0.0 }
 0x41f   : > { %2216 = vst [vmem:[%s259_s27 + $0x18] sm:$0xff] %v2208_v28 }
 0x444   : > { %v2129_v38 = vpop.f32.mrf.mxu0 }
 0x445   : > { %v2209_v22 = vmax.f32 %v2129_v38, 0.0 }
 0x446   : > { %v2131_v16 = vpop.f32.mrf.mxu0 }
 0x447   : > { %2217 = vst [vmem:[%s259_s27 + $0x20] sm:$0xff] %v2209_v22  ;;  %v2210_v0 = vmax.f32 %v2131_v16, 0.0 }
 0x449   : > { %2218 = vst [vmem:[%s259_s27 + $0x28] sm:$0xff] %v2210_v0 }
 0x44f   : > { %v2200_v41 = vpop.f32.mrf.mxu1 }
 0x450   : > { %v2211_v6 = vmax.f32 %v2200_v41, 0.0 }
 0x451   : > { %v2202_v33 = vpop.f32.mrf.mxu1 }
 0x452   : > { %2219 = vst [vmem:[%s259_s27 + $0x30] sm:$0xff] %v2211_v6  ;;  %v2212_v21 = vmax.f32 %v2202_v33, 0.0 }
 0x454   : > { %2220 = vst [vmem:[%s259_s27 + $0x38] sm:$0xff] %v2212_v21 }
 0x455 PF: > { %s16_s18 = sadd.s32 1, %s2507_s18  }
 0x456   : > { %p13_p1 = scmp.ge.s32.totalorder %s16_s18, 4  }
 0x458   :  { %15 = sbr.rel (!%p13_p1) target bundleno = 1 (0x1), region = 78 }
 0x45d   :  { %2242 = vsyncpa [#allocation4], 1 }
 0x45e   :  { %2244 = vsyncpa [#allocation4 + $0x1], 1 }

</bundles_post_ra>
